<compile_context>
chip_gen: v7x
topology: tpu7x:2x2x1
jax: 0.10.0
libtpu: 0.0.40
codegen_flags: <defaults>
</compile_context>

<pallas_src>
import math

import jax
import jax.numpy as jnp
from jax.experimental import pallas as pl
from jax.experimental.pallas import tpu as pltpu

C = 192          # channels fixed by the module
EPS = 1e-3       # BatchNorm eps


def _conv_stats_kernel(w_ref, xee_ref, xeeh_ref, xeo_ref, xeoh_ref, xoe_ref,
                       xoo_ref, y_ref, stat_ref, eband_ref, oband_ref):
    """Phase 1: depthwise 3x3/stride-2 conv on de-interleaved planes + BN stats.

    xee / xeo : even padded rows (even / odd padded cols), TH-row main band.
    xeeh/xeoh : single halo row (row (i+1)*TH of the even-row planes).
    xoe / xoo : odd padded rows (even / odd cols) -- no halo needed.
    y_ref     : raw conv output tile (TH, Wo, C).
    stat_ref  : (1, 2, C) per-tile [sum, sum-of-squares] over the tile.
    """
    TH, Wo, _ = y_ref.shape
    We = xee_ref.shape[1]                      # Wo + 1

    # Stitch the (TH+1)-row even-row bands (main rows + halo row) into VMEM
    # scratch so the kh=2 taps are plain leading-dim slices.
    eband_ref[0:TH, :, :] = xee_ref[...]
    eband_ref[TH:TH + 1, :, :] = xeeh_ref[...]
    oband_ref[0:TH, :, :] = xeo_ref[...]
    oband_ref[TH:TH + 1, :, :] = xeoh_ref[...]

    def w(k):                                  # (1, C) tap weight, lane-broadcast
        return w_ref[k:k + 1, :]

    # 9 taps, all contiguous slices; acc stays in vregs (functional chain).
    acc = eband_ref[0:TH, 0:Wo, :] * w(0)                   # (kh=0, kw=0)
    acc = acc + oband_ref[0:TH, :, :] * w(1)                # (0, 1)
    acc = acc + eband_ref[0:TH, 1:We, :] * w(2)             # (0, 2)
    acc = acc + xoe_ref[:, 0:Wo, :] * w(3)                  # (1, 0)
    acc = acc + xoo_ref[...] * w(4)                         # (1, 1)
    acc = acc + xoe_ref[:, 1:We, :] * w(5)                  # (1, 2)
    acc = acc + eband_ref[1:TH + 1, 0:Wo, :] * w(6)         # (2, 0)
    acc = acc + oband_ref[1:TH + 1, :, :] * w(7)            # (2, 1)
    acc = acc + eband_ref[1:TH + 1, 1:We, :] * w(8)         # (2, 2)

    y_ref[...] = acc.astype(y_ref.dtype)

    # Single-pass BN statistics: per-channel sum and sum of squares.
    stat_ref[:, 0:1, :] = jnp.sum(acc, axis=(0, 1), keepdims=True)
    stat_ref[:, 1:2, :] = jnp.sum(acc * acc, axis=(0, 1), keepdims=True)


def _bn_apply_kernel(y_ref, scale_ref, shift_ref, o_ref):
    """Phase 2: out = y * scale + shift (scale/shift are (1, C))."""
    o_ref[...] = (y_ref[...] * scale_ref[...] + shift_ref[...]).astype(o_ref.dtype)


@jax.jit
def dwconv_bn(x_nchw, w_oihw, gamma, beta):
    """x_nchw: (1, 192, H, W); w_oihw: (192, 1, 3, 3); gamma/beta: (192,)."""
    N, Cin, H, W = x_nchw.shape
    assert N == 1 and Cin == C and H % 2 == 0 and W % 2 == 0
    Ho, Wo = H // 2, W // 2
    We = Wo + 1

    # --- glue: NCHW -> HWC (channels on the lane dim) -------------------------
    x_hwc = jnp.transpose(x_nchw[0], (1, 2, 0))                        # (H, W, C)

    # De-interleave even/odd padded rows/cols; padding=1 is folded into the
    # leading edge of each plane (the trailing padded row/col is never read).
    xee = jnp.pad(x_hwc[1::2, 1::2, :], ((1, 0), (1, 0), (0, 0)))      # (Ho+1, We, C)
    xeo = jnp.pad(x_hwc[1::2, 0::2, :], ((1, 0), (0, 0), (0, 0)))      # (Ho+1, Wo, C)
    xoe = jnp.pad(x_hwc[0::2, 1::2, :], ((0, 0), (1, 0), (0, 0)))      # (Ho,   We, C)
    xoo = x_hwc[0::2, 0::2, :]                                         # (Ho,   Wo, C)

    # depthwise weight (C,1,3,3) -> (9, C): row k = kh*3 + kw, C on the lane dim
    w9c = jnp.transpose(w_oihw[:, 0, :, :].reshape(C, 9), (1, 0))

    # Output-row tiling (TH must divide Ho; 8 for the 112x112 module and tests).
    TH = math.gcd(Ho, 8)
    nt = Ho // TH

    itemsize = jnp.dtype(x_nchw.dtype).itemsize
    in_elems = ((Ho + 1) * We + (Ho + 1) * Wo + Ho * We + Ho * Wo) * C
    conv_cost = pl.CostEstimate(
        flops=(2 * 9 + 4) * Ho * Wo * C,
        transcendentals=0,
        bytes_accessed=in_elems * itemsize + 9 * C * 4
        + Ho * Wo * C * 4 + nt * 2 * C * 4,
    )

    y, stats = pl.pallas_call(
        _conv_stats_kernel,
        out_shape=(
            jax.ShapeDtypeStruct((Ho, Wo, C), jnp.float32),    # raw conv output
            jax.ShapeDtypeStruct((nt, 2, C), jnp.float32),     # per-tile sum / sumsq
        ),
        grid=(nt,),
        in_specs=[
            pl.BlockSpec((9, C), lambda i: (0, 0)),                     # weights
            pl.BlockSpec((TH, We, C), lambda i: (i, 0, 0)),             # xee main
            pl.BlockSpec((1, We, C), lambda i: (i * TH + TH, 0, 0)),    # xee halo row
            pl.BlockSpec((TH, Wo, C), lambda i: (i, 0, 0)),             # xeo main
            pl.BlockSpec((1, Wo, C), lambda i: (i * TH + TH, 0, 0)),    # xeo halo row
            pl.BlockSpec((TH, We, C), lambda i: (i, 0, 0)),             # xoe
            pl.BlockSpec((TH, Wo, C), lambda i: (i, 0, 0)),             # xoo
        ],
        out_specs=(
            pl.BlockSpec((TH, Wo, C), lambda i: (i, 0, 0)),
            pl.BlockSpec((1, 2, C), lambda i: (i, 0, 0)),
        ),
        scratch_shapes=[
            pltpu.VMEM((TH + 1, We, C), x_nchw.dtype),    # even-row / even-col band
            pltpu.VMEM((TH + 1, Wo, C), x_nchw.dtype),    # even-row / odd-col band
        ],
        compiler_params=pltpu.CompilerParams(dimension_semantics=("parallel",)),
        cost_estimate=conv_cost,
    )(w9c, xee, xee, xeo, xeo, xoe, xoo)

    # --- BatchNorm2d, training-mode batch statistics (N=1, biased variance) ---
    count = Ho * Wo
    ssum = jnp.sum(stats[:, 0, :], axis=0)
    ssq = jnp.sum(stats[:, 1, :], axis=0)
    mean = ssum / count
    var = jnp.maximum(ssq / count - mean * mean, 0.0)
    scale = gamma * jax.lax.rsqrt(var + EPS)               # (C,)
    shift = beta - mean * scale                            # (C,)

    bn_cost = pl.CostEstimate(
        flops=2 * Ho * Wo * C,
        transcendentals=0,
        bytes_accessed=Ho * Wo * C * 4 + Ho * Wo * C * itemsize + 2 * C * 4,
    )
    out_hwc = pl.pallas_call(
        _bn_apply_kernel,
        out_shape=jax.ShapeDtypeStruct((Ho, Wo, C), x_nchw.dtype),
        grid=(nt,),
        in_specs=[
            pl.BlockSpec((TH, Wo, C), lambda i: (i, 0, 0)),
            pl.BlockSpec((1, C), lambda i: (0, 0)),
            pl.BlockSpec((1, C), lambda i: (0, 0)),
        ],
        out_specs=pl.BlockSpec((TH, Wo, C), lambda i: (i, 0, 0)),
        compiler_params=pltpu.CompilerParams(dimension_semantics=("parallel",)),
        cost_estimate=bn_cost,
    )(y, scale.reshape(1, C), shift.reshape(1, C))

    # glue: HWC -> NCHW
    return jnp.transpose(out_hwc, (2, 0, 1))[None]


def reference(x_nchw, w_oihw, gamma, beta):
    """Pure-JAX reference with the same semantics (for a sanity check)."""
    y = jax.lax.conv_general_dilated(
        x_nchw, w_oihw, window_strides=(2, 2), padding=((1, 1), (1, 1)),
        feature_group_count=C, dimension_numbers=("NCHW", "OIHW", "NCHW"))
    mean = jnp.mean(y, axis=(0, 2, 3), keepdims=True)
    var = jnp.mean((y - mean) ** 2, axis=(0, 2, 3), keepdims=True)
    return ((y - mean) * jax.lax.rsqrt(var + EPS)
            * gamma[None, :, None, None] + beta[None, :, None, None])


if __name__ == "__main__":
    key = jax.random.PRNGKey(0)
    k1, k2, k3, k4 = jax.random.split(key, 4)

    # small spatial size consistent with the module (channels fixed at 192)
    H = W = 16
    x = jax.random.normal(k1, (1, C, H, W), jnp.float32)
    w = 0.1 * jax.random.normal(k2, (C, 1, 3, 3), jnp.float32)        # conv2d18 weight
    gamma = 1.0 + 0.1 * jax.random.normal(k3, (C,), jnp.float32)      # BN weight
    beta = 0.1 * jax.random.normal(k4, (C,), jnp.float32)             # BN bias

    out = dwconv_bn(x, w, gamma, beta)
    out = jax.block_until_ready(out)

    assert out.shape == (1, C, H // 2, W // 2), out.shape
    ref = reference(x, w, gamma, beta)
    err = float(jnp.max(jnp.abs(out - ref)))
    assert jnp.allclose(out, ref, atol=2e-3, rtol=2e-3), err

    print("KERNEL_OK")
</pallas_src>

<mosaic_0001>
module attributes {stable_mosaic.version = 11 : i64} {
  func.func @_conv_stats_kernel(%arg0: i32, %arg1: memref<9x192xf32, #tpu.memory_space<vmem>>, %arg2: memref<8x9x192xf32, #tpu.memory_space<vmem>>, %arg3: memref<1x9x192xf32, #tpu.memory_space<vmem>>, %arg4: memref<8x8x192xf32, #tpu.memory_space<vmem>>, %arg5: memref<1x8x192xf32, #tpu.memory_space<vmem>>, %arg6: memref<8x9x192xf32, #tpu.memory_space<vmem>>, %arg7: memref<8x8x192xf32, #tpu.memory_space<vmem>>, %arg8: memref<8x8x192xf32, #tpu.memory_space<vmem>>, %arg9: memref<1x2x192xf32, #tpu.memory_space<vmem>>, %arg10: memref<9x9x192xf32, #tpu.memory_space<vmem>>, %arg11: memref<9x8x192xf32, #tpu.memory_space<vmem>>) attributes {dimension_semantics = [#tpu.dimension_semantics<parallel>], iteration_bounds = array<i64: 1>, scalar_prefetch = 0 : i64, scratch_operands = 2 : i64, tpu.core_type = #tpu.core_type<tc>, window_params = [{pipeline_mode = #tpu.pipeline_mode<synchronous>, transform_indices = @transform_0, window_bounds = array<i64: 9, 192>}, {transform_indices = @transform_1, window_bounds = array<i64: 8, 9, 192>}, {transform_indices = @transform_2, window_bounds = array<i64: 1, 9, 192>}, {transform_indices = @transform_3, window_bounds = array<i64: 8, 8, 192>}, {transform_indices = @transform_4, window_bounds = array<i64: 1, 8, 192>}, {transform_indices = @transform_5, window_bounds = array<i64: 8, 9, 192>}, {transform_indices = @transform_6, window_bounds = array<i64: 8, 8, 192>}, {transform_indices = @transform_7, window_bounds = array<i64: 8, 8, 192>}, {transform_indices = @transform_8, window_bounds = array<i64: 1, 2, 192>}]} {
    %c0 = arith.constant 0 : index
    %c0_0 = arith.constant 0 : index
    %c0_1 = arith.constant 0 : index
    %0 = vector.load %arg2[%c0, %c0_0, %c0_1] : memref<8x9x192xf32, #tpu.memory_space<vmem>>, vector<8x9x192xf32>
    %c0_2 = arith.constant 0 : index
    %c0_3 = arith.constant 0 : index
    %c0_4 = arith.constant 0 : index
    %1 = vector.load %arg10[%c0_2, %c0_3, %c0_4] : memref<9x9x192xf32, #tpu.memory_space<vmem>>, vector<8x9x192xf32>
    tpu.vector_store %arg10[%c0_2, %c0_3, %c0_4], %0 {strides = array<i32>} : memref<9x9x192xf32, #tpu.memory_space<vmem>>, vector<8x9x192xf32>,
    %c0_5 = arith.constant 0 : index
    %c0_6 = arith.constant 0 : index
    %c0_7 = arith.constant 0 : index
    %2 = vector.load %arg3[%c0_5, %c0_6, %c0_7] : memref<1x9x192xf32, #tpu.memory_space<vmem>>, vector<1x9x192xf32>
    %c8 = arith.constant 8 : index
    %c0_8 = arith.constant 0 : index
    %c0_9 = arith.constant 0 : index
    %3 = vector.load %arg10[%c8, %c0_8, %c0_9] : memref<9x9x192xf32, #tpu.memory_space<vmem>>, vector<1x9x192xf32>
    tpu.vector_store %arg10[%c8, %c0_8, %c0_9], %2 {strides = array<i32>} : memref<9x9x192xf32, #tpu.memory_space<vmem>>, vector<1x9x192xf32>,
    %c0_10 = arith.constant 0 : index
    %c0_11 = arith.constant 0 : index
    %c0_12 = arith.constant 0 : index
    %4 = vector.load %arg4[%c0_10, %c0_11, %c0_12] : memref<8x8x192xf32, #tpu.memory_space<vmem>>, vector<8x8x192xf32>
    %c0_13 = arith.constant 0 : index
    %c0_14 = arith.constant 0 : index
    %c0_15 = arith.constant 0 : index
    %5 = vector.load %arg11[%c0_13, %c0_14, %c0_15] : memref<9x8x192xf32, #tpu.memory_space<vmem>>, vector<8x8x192xf32>
    tpu.vector_store %arg11[%c0_13, %c0_14, %c0_15], %4 {strides = array<i32>} : memref<9x8x192xf32, #tpu.memory_space<vmem>>, vector<8x8x192xf32>,
    %c0_16 = arith.constant 0 : index
    %c0_17 = arith.constant 0 : index
    %c0_18 = arith.constant 0 : index
    %6 = vector.load %arg5[%c0_16, %c0_17, %c0_18] : memref<1x8x192xf32, #tpu.memory_space<vmem>>, vector<1x8x192xf32>
    %c8_19 = arith.constant 8 : index
    %c0_20 = arith.constant 0 : index
    %c0_21 = arith.constant 0 : index
    %7 = vector.load %arg11[%c8_19, %c0_20, %c0_21] : memref<9x8x192xf32, #tpu.memory_space<vmem>>, vector<1x8x192xf32>
    tpu.vector_store %arg11[%c8_19, %c0_20, %c0_21], %6 {strides = array<i32>} : memref<9x8x192xf32, #tpu.memory_space<vmem>>, vector<1x8x192xf32>,
    %c0_22 = arith.constant 0 : index
    %c0_23 = arith.constant 0 : index
    %c0_24 = arith.constant 0 : index
    %8 = vector.load %arg10[%c0_22, %c0_23, %c0_24] : memref<9x9x192xf32, #tpu.memory_space<vmem>>, vector<8x8x192xf32>
    %c0_25 = arith.constant 0 : index
    %c0_26 = arith.constant 0 : index
    %9 = vector.load %arg1[%c0_25, %c0_26] : memref<9x192xf32, #tpu.memory_space<vmem>>, vector<1x192xf32>
    %10 = vector.shape_cast %9 : vector<1x192xf32> to vector<1x1x192xf32>
    %11 = vector.broadcast %10 : vector<1x1x192xf32> to vector<8x8x192xf32>
    %12 = arith.mulf %8, %11 : vector<8x8x192xf32>
    %c0_27 = arith.constant 0 : index
    %c0_28 = arith.constant 0 : index
    %c0_29 = arith.constant 0 : index
    %13 = vector.load %arg11[%c0_27, %c0_28, %c0_29] : memref<9x8x192xf32, #tpu.memory_space<vmem>>, vector<8x8x192xf32>
    %c1 = arith.constant 1 : index
    %c0_30 = arith.constant 0 : index
    %14 = vector.load %arg1[%c1, %c0_30] : memref<9x192xf32, #tpu.memory_space<vmem>>, vector<1x192xf32>
    %15 = vector.shape_cast %14 : vector<1x192xf32> to vector<1x1x192xf32>
    %16 = vector.broadcast %15 : vector<1x1x192xf32> to vector<8x8x192xf32>
    %17 = arith.mulf %13, %16 : vector<8x8x192xf32>
    %18 = arith.addf %12, %17 : vector<8x8x192xf32>
    %c0_31 = arith.constant 0 : index
    %c1_32 = arith.constant 1 : index
    %c0_33 = arith.constant 0 : index
    %19 = vector.load %arg10[%c0_31, %c1_32, %c0_33] : memref<9x9x192xf32, #tpu.memory_space<vmem>>, vector<8x8x192xf32>
    %c2 = arith.constant 2 : index
    %c0_34 = arith.constant 0 : index
    %20 = vector.load %arg1[%c2, %c0_34] : memref<9x192xf32, #tpu.memory_space<vmem>>, vector<1x192xf32>
    %21 = vector.shape_cast %20 : vector<1x192xf32> to vector<1x1x192xf32>
    %22 = vector.broadcast %21 : vector<1x1x192xf32> to vector<8x8x192xf32>
    %23 = arith.mulf %19, %22 : vector<8x8x192xf32>
    %24 = arith.addf %18, %23 : vector<8x8x192xf32>
    %c0_35 = arith.constant 0 : index
    %c0_36 = arith.constant 0 : index
    %c0_37 = arith.constant 0 : index
    %25 = vector.load %arg6[%c0_35, %c0_36, %c0_37] : memref<8x9x192xf32, #tpu.memory_space<vmem>>, vector<8x8x192xf32>
    %c3 = arith.constant 3 : index
    %c0_38 = arith.constant 0 : index
    %26 = vector.load %arg1[%c3, %c0_38] : memref<9x192xf32, #tpu.memory_space<vmem>>, vector<1x192xf32>
    %27 = vector.shape_cast %26 : vector<1x192xf32> to vector<1x1x192xf32>
    %28 = vector.broadcast %27 : vector<1x1x192xf32> to vector<8x8x192xf32>
    %29 = arith.mulf %25, %28 : vector<8x8x192xf32>
    %30 = arith.addf %24, %29 : vector<8x8x192xf32>
    %c0_39 = arith.constant 0 : index
    %c0_40 = arith.constant 0 : index
    %c0_41 = arith.constant 0 : index
    %31 = vector.load %arg7[%c0_39, %c0_40, %c0_41] : memref<8x8x192xf32, #tpu.memory_space<vmem>>, vector<8x8x192xf32>
    %c4 = arith.constant 4 : index
    %c0_42 = arith.constant 0 : index
    %32 = vector.load %arg1[%c4, %c0_42] : memref<9x192xf32, #tpu.memory_space<vmem>>, vector<1x192xf32>
    %33 = vector.shape_cast %32 : vector<1x192xf32> to vector<1x1x192xf32>
    %34 = vector.broadcast %33 : vector<1x1x192xf32> to vector<8x8x192xf32>
    %35 = arith.mulf %31, %34 : vector<8x8x192xf32>
    %36 = arith.addf %30, %35 : vector<8x8x192xf32>
    %c0_43 = arith.constant 0 : index
    %c1_44 = arith.constant 1 : index
    %c0_45 = arith.constant 0 : index
    %37 = vector.load %arg6[%c0_43, %c1_44, %c0_45] : memref<8x9x192xf32, #tpu.memory_space<vmem>>, vector<8x8x192xf32>
    %c5 = arith.constant 5 : index
    %c0_46 = arith.constant 0 : index
    %38 = vector.load %arg1[%c5, %c0_46] : memref<9x192xf32, #tpu.memory_space<vmem>>, vector<1x192xf32>
    %39 = vector.shape_cast %38 : vector<1x192xf32> to vector<1x1x192xf32>
    %40 = vector.broadcast %39 : vector<1x1x192xf32> to vector<8x8x192xf32>
    %41 = arith.mulf %37, %40 : vector<8x8x192xf32>
    %42 = arith.addf %36, %41 : vector<8x8x192xf32>
    %c1_47 = arith.constant 1 : index
    %c0_48 = arith.constant 0 : index
    %c0_49 = arith.constant 0 : index
    %43 = vector.load %arg10[%c1_47, %c0_48, %c0_49] : memref<9x9x192xf32, #tpu.memory_space<vmem>>, vector<8x8x192xf32>
    %c6 = arith.constant 6 : index
    %c0_50 = arith.constant 0 : index
    %44 = vector.load %arg1[%c6, %c0_50] : memref<9x192xf32, #tpu.memory_space<vmem>>, vector<1x192xf32>
    %45 = vector.shape_cast %44 : vector<1x192xf32> to vector<1x1x192xf32>
    %46 = vector.broadcast %45 : vector<1x1x192xf32> to vector<8x8x192xf32>
    %47 = arith.mulf %43, %46 : vector<8x8x192xf32>
    %48 = arith.addf %42, %47 : vector<8x8x192xf32>
    %c1_51 = arith.constant 1 : index
    %c0_52 = arith.constant 0 : index
    %c0_53 = arith.constant 0 : index
    %49 = vector.load %arg11[%c1_51, %c0_52, %c0_53] : memref<9x8x192xf32, #tpu.memory_space<vmem>>, vector<8x8x192xf32>
    %c7 = arith.constant 7 : index
    %c0_54 = arith.constant 0 : index
    %50 = vector.load %arg1[%c7, %c0_54] : memref<9x192xf32, #tpu.memory_space<vmem>>, vector<1x192xf32>
    %51 = vector.shape_cast %50 : vector<1x192xf32> to vector<1x1x192xf32>
    %52 = vector.broadcast %51 : vector<1x1x192xf32> to vector<8x8x192xf32>
    %53 = arith.mulf %49, %52 : vector<8x8x192xf32>
    %54 = arith.addf %48, %53 : vector<8x8x192xf32>
    %c1_55 = arith.constant 1 : index
    %c1_56 = arith.constant 1 : index
    %c0_57 = arith.constant 0 : index
    %55 = vector.load %arg10[%c1_55, %c1_56, %c0_57] : memref<9x9x192xf32, #tpu.memory_space<vmem>>, vector<8x8x192xf32>
    %c8_58 = arith.constant 8 : index
    %c0_59 = arith.constant 0 : index
    %56 = vector.load %arg1[%c8_58, %c0_59] : memref<9x192xf32, #tpu.memory_space<vmem>>, vector<1x192xf32>
    %57 = vector.shape_cast %56 : vector<1x192xf32> to vector<1x1x192xf32>
    %58 = vector.broadcast %57 : vector<1x1x192xf32> to vector<8x8x192xf32>
    %59 = arith.mulf %55, %58 : vector<8x8x192xf32>
    %60 = arith.addf %54, %59 : vector<8x8x192xf32>
    %c0_60 = arith.constant 0 : index
    %c0_61 = arith.constant 0 : index
    %c0_62 = arith.constant 0 : index
    %61 = vector.load %arg8[%c0_60, %c0_61, %c0_62] : memref<8x8x192xf32, #tpu.memory_space<vmem>>, vector<8x8x192xf32>
    tpu.vector_store %arg8[%c0_60, %c0_61, %c0_62], %60 {strides = array<i32>} : memref<8x8x192xf32, #tpu.memory_space<vmem>>, vector<8x8x192xf32>,
    %cst = arith.constant dense<0.000000e+00> : vector<192xf32>
    %62 = vector.multi_reduction <add>, %60, %cst [0, 1] : vector<8x8x192xf32> to vector<192xf32>
    %63 = vector.shape_cast %62 : vector<192xf32> to vector<1x1x192xf32>
    %c0_63 = arith.constant 0 : index
    %c0_64 = arith.constant 0 : index
    %c0_65 = arith.constant 0 : index
    %64 = vector.load %arg9[%c0_63, %c0_64, %c0_65] : memref<1x2x192xf32, #tpu.memory_space<vmem>>, vector<1x1x192xf32>
    tpu.vector_store %arg9[%c0_63, %c0_64, %c0_65], %63 {strides = array<i32>} : memref<1x2x192xf32, #tpu.memory_space<vmem>>, vector<1x1x192xf32>,
    %65 = arith.mulf %60, %60 : vector<8x8x192xf32>
    %cst_66 = arith.constant dense<0.000000e+00> : vector<192xf32>
    %66 = vector.multi_reduction <add>, %65, %cst_66 [0, 1] : vector<8x8x192xf32> to vector<192xf32>
    %67 = vector.shape_cast %66 : vector<192xf32> to vector<1x1x192xf32>
    %c0_67 = arith.constant 0 : index
    %c1_68 = arith.constant 1 : index
    %c0_69 = arith.constant 0 : index
    %68 = vector.load %arg9[%c0_67, %c1_68, %c0_69] : memref<1x2x192xf32, #tpu.memory_space<vmem>>, vector<1x1x192xf32>
    tpu.vector_store %arg9[%c0_67, %c1_68, %c0_69], %67 {strides = array<i32>} : memref<1x2x192xf32, #tpu.memory_space<vmem>>, vector<1x1x192xf32>,
    return
  }
  func.func @transform_0(%arg0: i32) -> (i32, i32) {
    %c0_i32 = arith.constant 0 : i32
    %c0_i32_0 = arith.constant 0 : i32
    %c0_i32_1 = arith.constant 0 : i32
    return %c0_i32, %c0_i32_0 : i32, i32
  }
  func.func @transform_1(%arg0: i32) -> (i32, i32, i32) {
    %c0_i32 = arith.constant 0 : i32
    %c0_i32_0 = arith.constant 0 : i32
    %c0_i32_1 = arith.constant 0 : i32
    return %arg0, %c0_i32, %c0_i32_0 : i32, i32, i32
  }
  func.func @transform_2(%arg0: i32) -> (i32, i32, i32) {
    %c8_i32 = arith.constant 8 : i32
    %0 = arith.muli %arg0, %c8_i32 : i32
    %c8_i32_0 = arith.constant 8 : i32
    %1 = arith.addi %0, %c8_i32_0 : i32
    %c0_i32 = arith.constant 0 : i32
    %c0_i32_1 = arith.constant 0 : i32
    %c0_i32_2 = arith.constant 0 : i32
    return %1, %c0_i32, %c0_i32_1 : i32, i32, i32
  }
  func.func @transform_3(%arg0: i32) -> (i32, i32, i32) {
    %c0_i32 = arith.constant 0 : i32
    %c0_i32_0 = arith.constant 0 : i32
    %c0_i32_1 = arith.constant 0 : i32
    return %arg0, %c0_i32, %c0_i32_0 : i32, i32, i32
  }
  func.func @transform_4(%arg0: i32) -> (i32, i32, i32) {
    %c8_i32 = arith.constant 8 : i32
    %0 = arith.muli %arg0, %c8_i32 : i32
    %c8_i32_0 = arith.constant 8 : i32
    %1 = arith.addi %0, %c8_i32_0 : i32
    %c0_i32 = arith.constant 0 : i32
    %c0_i32_1 = arith.constant 0 : i32
    %c0_i32_2 = arith.constant 0 : i32
    return %1, %c0_i32, %c0_i32_1 : i32, i32, i32
  }
  func.func @transform_5(%arg0: i32) -> (i32, i32, i32) {
    %c0_i32 = arith.constant 0 : i32
    %c0_i32_0 = arith.constant 0 : i32
    %c0_i32_1 = arith.constant 0 : i32
    return %arg0, %c0_i32, %c0_i32_0 : i32, i32, i32
  }
  func.func @transform_6(%arg0: i32) -> (i32, i32, i32) {
    %c0_i32 = arith.constant 0 : i32
    %c0_i32_0 = arith.constant 0 : i32
    %c0_i32_1 = arith.constant 0 : i32
    return %arg0, %c0_i32, %c0_i32_0 : i32, i32, i32
  }
  func.func @transform_7(%arg0: i32) -> (i32, i32, i32) {
    %c0_i32 = arith.constant 0 : i32
    %c0_i32_0 = arith.constant 0 : i32
    %c0_i32_1 = arith.constant 0 : i32
    return %arg0, %c0_i32, %c0_i32_0 : i32, i32, i32
  }
  func.func @transform_8(%arg0: i32) -> (i32, i32, i32) {
    %c0_i32 = arith.constant 0 : i32
    %c0_i32_0 = arith.constant 0 : i32
    %c0_i32_1 = arith.constant 0 : i32
    return %arg0, %c0_i32, %c0_i32_0 : i32, i32, i32
  }
}

module attributes {stable_mosaic.version = 11 : i64} {
  func.func @_bn_apply_kernel(%arg0: i32, %arg1: memref<8x8x192xf32, #tpu.memory_space<vmem>>, %arg2: memref<1x192xf32, #tpu.memory_space<vmem>>, %arg3: memref<1x192xf32, #tpu.memory_space<vmem>>, %arg4: memref<8x8x192xf32, #tpu.memory_space<vmem>>) attributes {dimension_semantics = [#tpu.dimension_semantics<parallel>], iteration_bounds = array<i64: 1>, scalar_prefetch = 0 : i64, scratch_operands = 0 : i64, tpu.core_type = #tpu.core_type<tc>, window_params = [{transform_indices = @transform_0, window_bounds = array<i64: 8, 8, 192>}, {pipeline_mode = #tpu.pipeline_mode<synchronous>, transform_indices = @transform_1, window_bounds = array<i64: 1, 192>}, {pipeline_mode = #tpu.pipeline_mode<synchronous>, transform_indices = @transform_2, window_bounds = array<i64: 1, 192>}, {transform_indices = @transform_3, window_bounds = array<i64: 8, 8, 192>}]} {
    %c0 = arith.constant 0 : index
    %c0_0 = arith.constant 0 : index
    %c0_1 = arith.constant 0 : index
    %0 = vector.load %arg1[%c0, %c0_0, %c0_1] : memref<8x8x192xf32, #tpu.memory_space<vmem>>, vector<8x8x192xf32>
    %c0_2 = arith.constant 0 : index
    %c0_3 = arith.constant 0 : index
    %1 = vector.load %arg2[%c0_2, %c0_3] : memref<1x192xf32, #tpu.memory_space<vmem>>, vector<1x192xf32>
    %2 = vector.shape_cast %1 : vector<1x192xf32> to vector<1x1x192xf32>
    %3 = vector.broadcast %2 : vector<1x1x192xf32> to vector<8x8x192xf32>
    %4 = arith.mulf %0, %3 : vector<8x8x192xf32>
    %c0_4 = arith.constant 0 : index
    %c0_5 = arith.constant 0 : index
    %5 = vector.load %arg3[%c0_4, %c0_5] : memref<1x192xf32, #tpu.memory_space<vmem>>, vector<1x192xf32>
    %6 = vector.shape_cast %5 : vector<1x192xf32> to vector<1x1x192xf32>
    %7 = vector.broadcast %6 : vector<1x1x192xf32> to vector<8x8x192xf32>
    %8 = arith.addf %4, %7 : vector<8x8x192xf32>
    %c0_6 = arith.constant 0 : index
    %c0_7 = arith.constant 0 : index
    %c0_8 = arith.constant 0 : index
    %9 = vector.load %arg4[%c0_6, %c0_7, %c0_8] : memref<8x8x192xf32, #tpu.memory_space<vmem>>, vector<8x8x192xf32>
    tpu.vector_store %arg4[%c0_6, %c0_7, %c0_8], %8 {strides = array<i32>} : memref<8x8x192xf32, #tpu.memory_space<vmem>>, vector<8x8x192xf32>,
    return
  }
  func.func @transform_0(%arg0: i32) -> (i32, i32, i32) {
    %c0_i32 = arith.constant 0 : i32
    %c0_i32_0 = arith.constant 0 : i32
    %c0_i32_1 = arith.constant 0 : i32
    return %arg0, %c0_i32, %c0_i32_0 : i32, i32, i32
  }
  func.func @transform_1(%arg0: i32) -> (i32, i32) {
    %c0_i32 = arith.constant 0 : i32
    %c0_i32_0 = arith.constant 0 : i32
    %c0_i32_1 = arith.constant 0 : i32
    return %c0_i32, %c0_i32_0 : i32, i32
  }
  func.func @transform_2(%arg0: i32) -> (i32, i32) {
    %c0_i32 = arith.constant 0 : i32
    %c0_i32_0 = arith.constant 0 : i32
    %c0_i32_1 = arith.constant 0 : i32
    return %c0_i32, %c0_i32_0 : i32, i32
  }
  func.func @transform_3(%arg0: i32) -> (i32, i32, i32) {
    %c0_i32 = arith.constant 0 : i32
    %c0_i32_0 = arith.constant 0 : i32
    %c0_i32_1 = arith.constant 0 : i32
    return %arg0, %c0_i32, %c0_i32_0 : i32, i32, i32
  }
}

</mosaic_0001>

<bundles_post_ra>
// kernel: squeeze.5
= control target key start
LH: loop header
LB: loop body
LE: loop exit
PB: predicated region body
PF: predicated region fallthrough
CT: control target
= control target key end

     0   :  { %vm32_vm0 = vcmask 523264   ;;  %s127_s0 = inlined_call_operand.vmem [shape: f32[192,3,3], index: 0, kind: input, shape index: {}]   ;;  %s128_s1 = inlined_call_operand.vmem [shape: f32[192,9], index: 1, kind: output, shape index: {}]  }
   0x1   :  { %v63_v0 = vld [vmem:[%s127_s0 + $0x14] sm:$0xf]  ;;  %v64_v1 = vld [vmem:[%s127_s0 + $0x10] sm:$0xf]  ;;  %v65_v2 = vld [vmem:[%s127_s0 + $0xc] sm:$0xf] }
   0x2   :  { %8 = vst [vmem:[#allocation0 + $0x28] sm:$0xf] %v63_v0  ;;  %13 = vst [vmem:[#allocation0 + $0x20] sm:$0xf] %v64_v1  ;;  %v66_v3 = vld [vmem:[%s127_s0 + $0x8] sm:$0xf] }
   0x3   :  { %18 = vst [vmem:[#allocation0 + $0x18] sm:$0xf] %v65_v2  ;;  %v67_v4 = vld [vmem:[%s127_s0 + $0x4] sm:$0xf]  ;;  %v28_v5 = vld [vmem:[%s127_s0] sm:$0xf] }
   0x4   :  { %23 = vst [vmem:[#allocation0 + $0x10] sm:$0xf] %v66_v3  ;;  %27 = vst [vmem:[#allocation0 + $0x8] sm:$0xf] %v67_v4 }
   0x5   :  { %29 = vst [vmem:[#allocation0] sm:$0xf] %v28_v5 }
   0x9   :  { %v41_v7 = vld [vmem:[#allocation0 + $0x28] sm:$0x7]   ;;  %v54_v8 = vld [vmem:[#allocation0 + $0x20] sm:$0x7]  }
   0xa   :  { %v36_v6 = vld [vmem:[#allocation0 + $0x18] sm:$0x7]   ;;  %70 = vst.msk [vmem:[%s128_s1 + $0xe] sm:$0x3] %vm32_vm0, %v41_v7   ;;  %71 = vst.msk [vmem:[%s128_s1 + $0x16] sm:$0x4] %vm32_vm0, %v41_v7  }
   0xb   :  { %v31_v9 = vld [vmem:[#allocation0 + $0x8] sm:$0x7]   ;;  %69 = vst.msk [vmem:[%s128_s1 + $0xb] sm:$0x7] %vm32_vm0, %v36_v6   ;;  %v50_v11 = vld [vmem:[#allocation0 + $0x10] sm:$0x7]  }
   0xc   :  { %v47_v10 = vld [vmem:[#allocation0] sm:$0x7]   ;;  %73 = vst [vmem:[%s128_s1 + $0x6] sm:$0x3] %v54_v8   ;;  %74 = vst [vmem:[%s128_s1 + $0xe] sm:$0x4] %v54_v8  }
   0xd   :  { %68 = vst.msk [vmem:[%s128_s1 + $0x8] sm:$0x7] %vm32_vm0, %v31_v9   ;;  %48 = vst [vmem:[%s128_s1] sm:$0x7] %v47_v10  }
   0xe   :  { %72 = vst [vmem:[%s128_s1 + $0x3] sm:$0x7] %v50_v11  }

// kernel: dwconv_bn.3
= control target key start
LH: loop header
LB: loop body
LE: loop exit
PB: predicated region body
PF: predicated region fallthrough
CT: control target
= control target key end

     0   :  { %v33_v0 = vlaneseq  ;;  %s244_s0 = inlined_call_operand.vmem [shape: f32[8,8,192], index: 0, kind: input, shape index: {}]   ;;  %s245_s1 = inlined_call_operand.vmem [shape: f32[1,192], index: 1, kind: input, shape index: {}]   ;;  %s246_s2 = inlined_call_operand.vmem [shape: f32[1,192], index: 2, kind: input, shape index: {}]   ;;  %s247_s3 = inlined_call_operand.hbm [shape: f32[8,8,192], index: 3, kind: output, shape index: {}]  }
   0x1   :  { %v31_v2 = vld [vmem:[%s245_s1] sm:$0x3]  ;;  %v16_v6 = vld [vmem:[%s244_s0 + $0x8] sm:$0xff]  ;;  %v17_v8 = vld [vmem:[%s244_s0 + $0x10] sm:$0xff] }
   0x2   :  { %v34_v1 = vshrl.u32 %v33_v0, 7  ;;  %v59_v3 = vld [vmem:[%s246_s2] sm:$0x3]  ;;  %v18_v9 = vld [vmem:[%s244_s0 + $0x18] sm:$0xff]  ;;  %v20_v11 = vld [vmem:[%s244_s0 + $0x28] sm:$0xff] }
   0x3   :  { %v15_v4 = vld [vmem:[%s244_s0] sm:$0xff]  ;;  %v21_v16 = vld [vmem:[%s244_s0 + $0x30] sm:$0xff]  ;;  %v22_v17 = vld [vmem:[%s244_s0 + $0x38] sm:$0xff] }
   0x4   :  { %v35_v5 = vsub.s32 0, %v34_v1  ;;  %v39_v7 = vsub.s32 1, %v34_v1  ;;  %v19_v10 = vld [vmem:[%s244_s0 + $0x20] sm:$0xff] }
   0x6   :  { %v36_v12 = vrot.slane %v31_v2, %v35_v5  ;;  %v64_v13 = vrot.slane %v59_v3, %v35_v5  ;;  %v40_v14 = vrot.slane %v31_v2, %v39_v7  ;;  %v68_v15 = vrot.slane %v59_v3, %v39_v7 }
   0x7   :  { %8 = vsyncpa [#allocation3], 0  ;;  %vm88_vm0 = vcmask 523264   ;;  %v23_v22 = vld [vmem:[%s244_s0 + $0x40] sm:$0xff]  ;;  %v24_v23 = vld [vmem:[%s244_s0 + $0x48] sm:$0xff]  ;;  %s147_s19 = smov [#allocation2]  }
   0x8   :  { %v43_v18 = vmul.f32 %v36_v12, %v15_v4  ;;  %v44_v19 = vmul.f32 %v40_v14, %v16_v6  ;;  %v45_v20 = vmul.f32 %v36_v12, %v17_v8  ;;  %v46_v21 = vmul.f32 %v40_v14, %v18_v9  ;;  %v25_v28 = vld [vmem:[%s244_s0 + $0x50] sm:$0xff]  ;;  %v26_v29 = vld [vmem:[%s244_s0 + $0x58] sm:$0xff]  ;;  %v27_v30 = vld [vmem:[%s244_s0 + $0x60] sm:$0xff]  ;;  %s109_s20 = sshll.u32 %s147_s19, 4  ;;  %s110_s20 = int_to_ptr.vmem [resolvable:$true] %s109_s20 }
   0x9   :  { %v47_v24 = vmul.f32 %v36_v12, %v19_v10  ;;  %v48_v25 = vmul.f32 %v40_v14, %v20_v11  ;;  %v49_v26 = vmul.f32 %v36_v12, %v21_v16  ;;  %v50_v27 = vmul.f32 %v40_v14, %v22_v17  ;;  %v28_v35 = vld [vmem:[%s244_s0 + $0x68] sm:$0xff]  ;;  %v29_v36 = vld [vmem:[%s244_s0 + $0x70] sm:$0xff]  ;;  %v30_v37 = vld [vmem:[%s244_s0 + $0x78] sm:$0xff]  ;;  %s123_s0 = scalar_lea.vmem %s110_s20, 2048  ;;  %p128_p1 = scmp.lt.s32.totalorder %s110_s20, %s110_s20 }
   0xa   :  { %v71_v31 = vadd.f32 %v64_v13, %v43_v18  ;;  %v72_v32 = vadd.f32 %v68_v15, %v44_v19  ;;  %v73_v33 = vadd.f32 %v64_v13, %v45_v20  ;;  %v74_v34 = vadd.f32 %v68_v15, %v46_v21  ;;  %p124_p0 = scmp.ne.s32.totalorder %s110_s20, %s123_s0  ;;  %p129_p2 = scmp.lt.s32.totalorder %s123_s0, %s123_s0 }
   0xb   :  { %v75_v38 = vadd.f32 %v64_v13, %v47_v24  ;;  %v76_v39 = vadd.f32 %v68_v15, %v48_v25  ;;  %v77_v40 = vadd.f32 %v64_v13, %v49_v26  ;;  %v78_v41 = vadd.f32 %v68_v15, %v50_v27 }
   0xc   :  { %87 = vst [vmem:[#allocation2] sm:$0xff] %v71_v31  ;;  %89 = vst.msk [vmem:[#allocation2 + $0x8] sm:$0xff] %vm88_vm0, %v72_v32  ;;  %v51_v42 = vmul.f32 %v36_v12, %v23_v22  ;;  %v52_v43 = vmul.f32 %v40_v14, %v24_v23  ;;  %v53_v44 = vmul.f32 %v36_v12, %v25_v28  ;;  %p130_p3 = por %p129_p2, %p128_p1 }
   0xd   :  { %90 = vst [vmem:[#allocation2 + $0x10] sm:$0xff] %v73_v33  ;;  %91 = vst.msk [vmem:[#allocation2 + $0x18] sm:$0xff] %vm88_vm0, %v74_v34  ;;  %v54_v45 = vmul.f32 %v40_v14, %v26_v29  ;;  %v55_v46 = vmul.f32 %v36_v12, %v27_v30  ;;  %v56_v47 = vmul.f32 %v40_v14, %v28_v35 }
   0xe   :  { %92 = vst [vmem:[#allocation2 + $0x20] sm:$0xff] %v75_v38  ;;  %93 = vst.msk [vmem:[#allocation2 + $0x28] sm:$0xff] %vm88_vm0, %v76_v39  ;;  %v57_v48 = vmul.f32 %v36_v12, %v29_v36  ;;  %v58_v49 = vmul.f32 %v40_v14, %v30_v37  ;;  %v79_v50 = vadd.f32 %v64_v13, %v51_v42  ;;  %p131_p4 = pnand %p130_p3, %p124_p0 }
   0xf   :  { %94 = vst [vmem:[#allocation2 + $0x30] sm:$0xff] %v77_v40  ;;  %95 = vst.msk [vmem:[#allocation2 + $0x38] sm:$0xff] %vm88_vm0, %v78_v41  ;;  %v80_v51 = vadd.f32 %v68_v15, %v52_v43  ;;  %v81_v52 = vadd.f32 %v64_v13, %v53_v44  ;;  %v82_v53 = vadd.f32 %v68_v15, %v54_v45 }
  0x10   :  { %v83_v54 = vadd.f32 %v64_v13, %v55_v46  ;;  %v84_v55 = vadd.f32 %v68_v15, %v56_v47  ;;  %v85_v56 = vadd.f32 %v64_v13, %v57_v48  ;;  %v86_v57 = vadd.f32 %v68_v15, %v58_v49  ;;  %96 = vst [vmem:[#allocation2 + $0x40] sm:$0xff] %v79_v50 }
  0x11   :  { %97 = vst.msk [vmem:[#allocation2 + $0x48] sm:$0xff] %vm88_vm0, %v80_v51  ;;  %98 = vst [vmem:[#allocation2 + $0x50] sm:$0xff] %v81_v52 }
  0x12   :  { %99 = vst.msk [vmem:[#allocation2 + $0x58] sm:$0xff] %vm88_vm0, %v82_v53  ;;  %100 = vst [vmem:[#allocation2 + $0x60] sm:$0xff] %v83_v54 }
  0x13   :  { %101 = vst.msk [vmem:[#allocation2 + $0x68] sm:$0xff] %vm88_vm0, %v84_v55  ;;  %102 = vst [vmem:[#allocation2 + $0x70] sm:$0xff] %v85_v56 }
  0x14   :  { %103 = vst.msk [vmem:[#allocation2 + $0x78] sm:$0xff] %vm88_vm0, %v86_v57 }
  0x15   :  { %134 = shalt.err (!%p131_p4)
}
  0x16   :  { %s135_s1 = scalar_lea.hbm %s247_s3, 2048 }
  0x17   :  { %p136_p5 = scmp.ne.s32.totalorder %s247_s3, %s135_s1  ;;  %p139_p6 = scmp.lt.u32.totalorder %s135_s1, %s247_s3 }
  0x19   :  { %p141_p7 = pnand %p139_p6, %p136_p5 }
  0x1b   :  { %144 = shalt.err (!%p141_p7)
}
  0x1c   :  { %s148_s26 = smov 256   ;;  %s149_s27 = smov 16  }
  0x1d   :  { %115 = dma.vmem_to_hbm [thread:$0]  %s110_s20, 2048, %s247_s3, [#allocation3], %s148_s26, %s148_s26, %s149_s27  }
  0x1e   :  { %145 = dma.done.wait [#allocation3], 2048  }
  0x1f   :  { %146 = vsyncadd [#allocation3], 4294965248 }
  0x20   :  { %119 = vsyncpa [#allocation3], 1 }

// kernel: dwconv_bn.2
= control target key start
LH: loop header
LB: loop body
LE: loop exit
PB: predicated region body
PF: predicated region fallthrough
CT: control target
= control target key end

     0   :  { %vm111_vm0 = vcmask 523264   ;;  %vm114_vm1 = vcmask 516096   ;;  %v208_v24 = vlaneseq  ;;  %vm404_vm2 = vcmask 1046528   ;;  %s2263_s1 = inlined_call_operand.vmem [shape: f32[9,9,192], index: 1, kind: input, shape index: {}, may-alias: {1,2}]   ;;  %s2264_s3 = inlined_call_operand.vmem [shape: f32[9,8,192], index: 3, kind: input, shape index: {}, may-alias: {3,4}]   ;;  %s2265_s2 = inlined_call_operand.vmem [shape: f32[9,9,192], index: 2, kind: input, shape index: {}, may-alias: {1,2}]   ;;  %s2266_s4 = inlined_call_operand.vmem [shape: f32[9,8,192], index: 4, kind: input, shape index: {}, may-alias: {3,4}]   ;;  %s2267_s0 = inlined_call_operand.vmem [shape: f32[9,192], index: 0, kind: input, shape index: {}]   ;;  %s2268_s5 = inlined_call_operand.vmem [shape: f32[8,9,192], index: 5, kind: input, shape index: {}]   ;;  %s2269_s6 = inlined_call_operand.vmem [shape: f32[8,8,192], index: 6, kind: input, shape index: {}]   ;;  %s2270_s7 = inlined_call_operand.vmem [shape: f32[8,8,192], index: 7, kind: output, shape index: {0}]   ;;  %s2271_s8 = inlined_call_operand.vmem [shape: f32[1,2,192], index: 8, kind: output, shape index: {1}]  }
   0x1   :  { %v1337_v0 = vld [vmem:[%s2263_s1] sm:$0xff]  ;;  %v79_v1 = vld [vmem:[%s2263_s1 + $0x8] sm:$0xff]  ;;  %v80_v2 = vld [vmem:[%s2263_s1 + $0x10] sm:$0x1] }
   0x2   :  { %110 = vst [vmem:[#allocation2] sm:$0xff] %v1337_v0  ;;  %112 = vst.msk [vmem:[#allocation2 + $0x8] sm:$0xff] %vm111_vm0, %v79_v1  ;;  %v81_v3 = vld [vmem:[%s2263_s1 + $0x18] sm:$0x1]  ;;  %v1353_v4 = vld [vmem:[%s2263_s1 + $0x20] sm:$0xff]  ;;  %v1485_v37 = vshrl.u32 %v208_v24, 7 }
   0x3   :  { %113 = vst [vmem:[#allocation2 + $0x10] sm:$0x1] %v80_v2  ;;  %v83_v5 = vld [vmem:[%s2263_s1 + $0x28] sm:$0xff]  ;;  %115 = vst.msk [vmem:[#allocation2 + $0x18] sm:$0x1] %vm114_vm1, %v81_v3  ;;  %v1370_v8 = vld [vmem:[%s2263_s1 + $0x40] sm:$0xff] }
   0x4   :  { %116 = vst [vmem:[#allocation2 + $0x20] sm:$0xff] %v1353_v4  ;;  %117 = vst.msk [vmem:[#allocation2 + $0x28] sm:$0xff] %vm111_vm0, %v83_v5  ;;  %v84_v6 = vld [vmem:[%s2263_s1 + $0x30] sm:$0x1]  ;;  %v85_v7 = vld [vmem:[%s2263_s1 + $0x38] sm:$0x1] }
   0x5   :  { %118 = vst [vmem:[#allocation2 + $0x30] sm:$0x1] %v84_v6  ;;  %119 = vst.msk [vmem:[#allocation2 + $0x38] sm:$0x1] %vm114_vm1, %v85_v7  ;;  %v87_v9 = vld [vmem:[%s2263_s1 + $0x48] sm:$0xff]  ;;  %v1388_v12 = vld [vmem:[%s2263_s1 + $0x60] sm:$0xff] }
   0x6   :  { %120 = vst [vmem:[#allocation2 + $0x40] sm:$0xff] %v1370_v8  ;;  %v88_v10 = vld [vmem:[%s2263_s1 + $0x50] sm:$0x1]  ;;  %v89_v11 = vld [vmem:[%s2263_s1 + $0x58] sm:$0x1]  ;;  %121 = vst.msk [vmem:[#allocation2 + $0x48] sm:$0xff] %vm111_vm0, %v87_v9 }
   0x7   :  { %122 = vst [vmem:[#allocation2 + $0x50] sm:$0x1] %v88_v10  ;;  %123 = vst.msk [vmem:[#allocation2 + $0x58] sm:$0x1] %vm114_vm1, %v89_v11  ;;  %v91_v13 = vld [vmem:[%s2263_s1 + $0x68] sm:$0xff]  ;;  %v1404_v16 = vld [vmem:[%s2263_s1 + $0x80] sm:$0xff] }
   0x8   :  { %v92_v14 = vld [vmem:[%s2263_s1 + $0x70] sm:$0x1]  ;;  %124 = vst [vmem:[#allocation2 + $0x60] sm:$0xff] %v1388_v12  ;;  %125 = vst.msk [vmem:[#allocation2 + $0x68] sm:$0xff] %vm111_vm0, %v91_v13  ;;  %v93_v15 = vld [vmem:[%s2263_s1 + $0x78] sm:$0x1] }
   0x9   :  { %126 = vst [vmem:[#allocation2 + $0x70] sm:$0x1] %v92_v14  ;;  %v95_v17 = vld [vmem:[%s2263_s1 + $0x88] sm:$0xff]  ;;  %127 = vst.msk [vmem:[#allocation2 + $0x78] sm:$0x1] %vm114_vm1, %v93_v15  ;;  %v1421_v20 = vld [vmem:[%s2263_s1 + $0xa0] sm:$0xff] }
   0xa   :  { %128 = vst [vmem:[#allocation2 + $0x80] sm:$0xff] %v1404_v16  ;;  %129 = vst.msk [vmem:[#allocation2 + $0x88] sm:$0xff] %vm111_vm0, %v95_v17  ;;  %v96_v18 = vld [vmem:[%s2263_s1 + $0x90] sm:$0x1]  ;;  %v97_v19 = vld [vmem:[%s2263_s1 + $0x98] sm:$0x1] }
   0xb   :  { %130 = vst [vmem:[#allocation2 + $0x90] sm:$0x1] %v96_v18  ;;  %131 = vst.msk [vmem:[#allocation2 + $0x98] sm:$0x1] %vm114_vm1, %v97_v19  ;;  %v99_v21 = vld [vmem:[%s2263_s1 + $0xa8] sm:$0xff]  ;;  %v156_v28 = vld [vmem:[%s2264_s3 + $0x18] sm:$0xff] }
   0xc   :  { %132 = vst [vmem:[#allocation2 + $0xa0] sm:$0xff] %v1421_v20  ;;  %v100_v22 = vld [vmem:[%s2263_s1 + $0xb0] sm:$0x1]  ;;  %v101_v23 = vld [vmem:[%s2263_s1 + $0xb8] sm:$0x1]  ;;  %133 = vst.msk [vmem:[#allocation2 + $0xa8] sm:$0xff] %vm111_vm0, %v99_v21 }
   0xd   :  { %134 = vst [vmem:[#allocation2 + $0xb0] sm:$0x1] %v100_v22  ;;  %135 = vst.msk [vmem:[#allocation2 + $0xb8] sm:$0x1] %vm114_vm1, %v101_v23  ;;  %v103_v25 = vld [vmem:[%s2263_s1 + $0xc8] sm:$0xff]  ;;  %v102_v29 = vld [vmem:[%s2263_s1 + $0xc0] sm:$0xff] }
   0xe   :  { %v105_v26 = vld [vmem:[%s2263_s1 + $0xd8] sm:$0x1]  ;;  %v154_v27 = vld [vmem:[%s2264_s3 + $0x8] sm:$0xff]  ;;  %137 = vst.msk [vmem:[#allocation2 + $0xc8] sm:$0xff] %vm111_vm0, %v103_v25  ;;  %v104_v30 = vld [vmem:[%s2263_s1 + $0xd0] sm:$0x1] }
   0xf   :  { %139 = vst.msk [vmem:[#allocation2 + $0xd8] sm:$0x1] %vm114_vm1, %v105_v26  ;;  %136 = vst [vmem:[#allocation2 + $0xc0] sm:$0xff] %v102_v29  ;;  %v1461_v31 = vld [vmem:[%s2264_s3] sm:$0xff]  ;;  %v1466_v32 = vld [vmem:[%s2264_s3 + $0x10] sm:$0xff]  ;;  %v1536_v50 = vsub.s32 0, %v1485_v37 }
  0x10   :  { %170 = vst.msk [vmem:[#allocation3 + $0x8] sm:$0xff] %vm111_vm0, %v154_v27  ;;  %172 = vst.msk [vmem:[#allocation3 + $0x18] sm:$0xff] %vm111_vm0, %v156_v28  ;;  %v1471_v33 = vld [vmem:[%s2264_s3 + $0x20] sm:$0xff]  ;;  %v158_v34 = vld [vmem:[%s2264_s3 + $0x28] sm:$0xff]  ;;  %v1549_v54 = vsub.s32 1, %v1485_v37  ;;  %vm1179_vm3 = vcmp.lt.s32.totalorder %v208_v24, 192 }
  0x11   :  { %138 = vst [vmem:[#allocation2 + $0xd0] sm:$0x1] %v104_v30  ;;  %v1479_v35 = vld [vmem:[%s2264_s3 + $0x30] sm:$0xff]  ;;  %v160_v36 = vld [vmem:[%s2264_s3 + $0x38] sm:$0xff]  ;;  %174 = vst.msk [vmem:[#allocation3 + $0x28] sm:$0xff] %vm111_vm0, %v158_v34 }
  0x12   :  { %176 = vst.msk [vmem:[#allocation3 + $0x38] sm:$0xff] %vm111_vm0, %v160_v36  ;;  %v1492_v38 = vld [vmem:[%s2264_s3 + $0x40] sm:$0xff]  ;;  %v162_v39 = vld [vmem:[%s2264_s3 + $0x48] sm:$0xff]  ;;  %v1500_v40 = vld [vmem:[%s2264_s3 + $0x50] sm:$0xff] }
  0x13   :  { %178 = vst.msk [vmem:[#allocation3 + $0x48] sm:$0xff] %vm111_vm0, %v162_v39  ;;  %179 = vst [vmem:[#allocation3 + $0x50] sm:$0xff] %v1500_v40  ;;  %v164_v41 = vld [vmem:[%s2264_s3 + $0x58] sm:$0xff]  ;;  %v166_v42 = vld [vmem:[%s2264_s3 + $0x68] sm:$0xff] }
  0x14   :  { %v165_v43 = vld [vmem:[%s2264_s3 + $0x60] sm:$0xff]  ;;  %180 = vst.msk [vmem:[#allocation3 + $0x58] sm:$0xff] %vm111_vm0, %v164_v41  ;;  %182 = vst.msk [vmem:[#allocation3 + $0x68] sm:$0xff] %vm111_vm0, %v166_v42  ;;  %v107_v44 = vld [vmem:[%s2263_s1 + $0xe8] sm:$0xff] }
  0x15   :  { %181 = vst [vmem:[#allocation3 + $0x60] sm:$0xff] %v165_v43  ;;  %v109_v45 = vld [vmem:[%s2263_s1 + $0xf8] sm:$0x1]  ;;  %v106_v46 = vld [vmem:[%s2263_s1 + $0xe0] sm:$0xff]  ;;  %141 = vst.msk [vmem:[#allocation2 + $0xe8] sm:$0xff] %vm111_vm0, %v107_v44 }
  0x16   :  { %143 = vst.msk [vmem:[#allocation2 + $0xf8] sm:$0x1] %vm114_vm1, %v109_v45  ;;  %140 = vst [vmem:[#allocation2 + $0xe0] sm:$0xff] %v106_v46  ;;  %v108_v47 = vld [vmem:[%s2263_s1 + $0xf0] sm:$0x1]  ;;  %v168_v48 = vld [vmem:[%s2264_s3 + $0x78] sm:$0xff] }
  0x17   :  { %v167_v49 = vld [vmem:[%s2264_s3 + $0x70] sm:$0xff]  ;;  %142 = vst [vmem:[#allocation2 + $0xf0] sm:$0x1] %v108_v47  ;;  %184 = vst.msk [vmem:[#allocation3 + $0x78] sm:$0xff] %vm111_vm0, %v168_v48  ;;  %v1273_v51 = vld [vmem:[%s2265_s2 + $0x108] sm:$0xff] }
  0x18   :  { %183 = vst [vmem:[#allocation3 + $0x70] sm:$0xff] %v167_v49  ;;  %v1272_v52 = vld [vmem:[%s2265_s2 + $0x100] sm:$0xff]  ;;  %v1275_v53 = vld [vmem:[%s2265_s2 + $0x118] sm:$0x1]  ;;  %150 = vst.msk [vmem:[#allocation2 + $0x108] sm:$0xff] %vm111_vm0, %v1273_v51 }
  0x19   :  { %149 = vst [vmem:[#allocation2 + $0x100] sm:$0xff] %v1272_v52  ;;  %152 = vst.msk [vmem:[#allocation2 + $0x118] sm:$0x1] %vm114_vm1, %v1275_v53  ;;  %v1274_v55 = vld [vmem:[%s2265_s2 + $0x110] sm:$0x1]  ;;  %v1277_v56 = vld [vmem:[%s2266_s4 + $0x88] sm:$0xff] }
  0x1a   :  { %v1276_v57 = vld [vmem:[%s2266_s4 + $0x80] sm:$0xff]  ;;  %151 = vst [vmem:[#allocation2 + $0x110] sm:$0x1] %v1274_v55  ;;  %189 = vst.msk [vmem:[#allocation3 + $0x88] sm:$0xff] %vm111_vm0, %v1277_v56  ;;  %v297_v63 = vld [vmem:[#allocation2 + $0x10] sm:$0x1] }
  0x1b   :  { %188 = vst [vmem:[#allocation3 + $0x80] sm:$0xff] %v1276_v57  ;;  %v206_v58 = vld [vmem:[%s2267_s0] ss:$8 sm:$0x3]  ;;  %v295_v62 = vld [vmem:[#allocation2] sm:$0xfe] }
  0x1c   :  { %v1278_v59 = vld [vmem:[%s2267_s0 + $0x1] ss:$8 sm:$0x3]  ;;  %v1570_v60 = vrot.slane %v206_v58, %v1536_v50  ;;  %v1279_v1 = vld [vmem:[%s2267_s0 + $0x2] ss:$8 sm:$0x3]  ;;  %v1582_v3 = vrot.slane %v206_v58, %v1549_v54 }
  0x1d   :  { %v1573_v61 = vrot.slane %v1278_v59, %v1536_v50  ;;  %v1280_v2 = vld [vmem:[%s2267_s0 + $0x3] ss:$8 sm:$0x3]  ;;  %v1585_v5 = vrot.slane %v1278_v59, %v1549_v54  ;;  %v1592_v9 = vrot.slane %v1279_v1, %v1536_v50  ;;  %v1281_v13 = vld [vmem:[%s2267_s0 + $0x4] ss:$8 sm:$0x3]  ;;  %v1613_v18 = vrot.slane %v1279_v1, %v1549_v54 }
  0x1e   :  { %v218_v6 = vmul.f32 %v1570_v60, %v1337_v0  ;;  %v485_v10 = vld [vmem:[%s2268_s5] sm:$0xff]  ;;  %v1598_v11 = vrot.slane %v1280_v2, %v1536_v50  ;;  %v1604_v14 = vrot.slane %v1281_v13, %v1536_v50  ;;  %v191_v17 = vld [vmem:[#allocation2 + $0x8] sm:$0xff]  ;;  %v609_v23 = vld [vmem:[%s2268_s5 + $0x10] sm:$0x1]  ;;  %v1627_v26 = vrot.slane %v1280_v2, %v1549_v54 }
  0x1f   :  { %v263_v7 = vmul.f32 %v1573_v61, %v1461_v31  ;;  %v607_v0 = vld [vmem:[%s2268_s5] sm:$0xfe]  ;;  %v340_v19 = vmul.f32 %v1592_v9, %v295_v62  ;;  %v342_v21 = vmul.f32 %v1592_v9, %v297_v63  ;;  %v1630_v27 = vrot.slane %v1281_v13, %v1549_v54  ;;  %v235_v39 = vld [vmem:[#allocation3 + $0x8] sm:$0xff]  ;;  %v1285_v43 = vld [vmem:[%s2267_s0 + $0x10] ss:$8 sm:$0x3] }
  0x20   :  { %v1282_v15 = vld [vmem:[%s2267_s0 + $0x5] ss:$8 sm:$0x3]  ;;  %v1283_v25 = vld [vmem:[%s2267_s0 + $0x6] ss:$8 sm:$0x3]  ;;  %v514_v29 = vmul.f32 %v1598_v11, %v485_v10  ;;  %v219_v44 = vmul.f32 %v1582_v3, %v191_v17  ;;  %v264_v45 = vmul.f32 %v1585_v5, %v235_v39  ;;  %v1657_v57 = vrot.slane %v1285_v43, %v1536_v50 }
  0x21   :  { %v546_v22 = vld [vmem:[%s2269_s6] sm:$0xff]  ;;  %v279_v28 = vadd.f32 %v263_v7, %v218_v6  ;;  %v1634_v30 = vrot.slane %v1282_v15, %v1536_v50  ;;  %v1637_v31 = vrot.slane %v1283_v25, %v1536_v50  ;;  %v405_v41 = vrot.slane %v340_v19, 1  ;;  %v922_v51 = vld [vmem:[#allocation2 + $0x30] sm:$0x1]  ;;  %v296_v52 = vld [vmem:[#allocation2 + $0x8] sm:$0xfe] }
  0x22   :  { %v1284_v34 = vld [vmem:[%s2267_s0 + $0x7] ss:$8 sm:$0x3]  ;;  %v406_v42 = vrot.slane %v342_v21, 1  ;;  %v575_v46 = vmul.f32 %v1604_v14, %v546_v22  ;;  %v298_v53 = vld [vmem:[#allocation2 + $0x18] sm:$0x1]  ;;  %v341_v58 = vmul.f32 %v1613_v18, %v296_v52  ;;  %v967_v7 = vmul.f32 %v1657_v57, %v922_v51 }
  0x23   :  { %v920_v36 = vld [vmem:[#allocation2 + $0x20] sm:$0xfe]  ;;  %v652_v47 = vmul.f32 %v1634_v30, %v607_v0  ;;  %v654_v48 = vmul.f32 %v1634_v30, %v609_v23  ;;  %v1651_v49 = vrot.slane %v1284_v34, %v1536_v50  ;;  %v826_v56 = vmul.f32 %v1637_v31, %v1353_v4  ;;  %v486_v59 = vld [vmem:[%s2268_s5 + $0x8] sm:$0xff]  ;;  %v610_v23 = vld [vmem:[%s2268_s5 + $0x18] sm:$0x1] }
  0x24   :  { %v407_v55 = vsel %vm404_vm2, %v405_v41, %v406_v42  ;;  %v343_v2 = vmul.f32 %v1613_v18, %v298_v53  ;;  %v965_v6 = vmul.f32 %v1657_v57, %v920_v36  ;;  %v280_v10 = vadd.f32 %v264_v45, %v219_v44  ;;  %v547_v50 = vld [vmem:[%s2269_s6 + $0x8] sm:$0xff] }
  0x25   :  { %v469_v62 = vadd.f32 %v407_v55, %v279_v28  ;;  %v716_v63 = vrot.slane %v652_v47, 1  ;;  %v717_v1 = vrot.slane %v654_v48, 1  ;;  %v408_v13 = vrot.slane %v341_v58, 1  ;;  %v608_v22 = vld [vmem:[%s2268_s5 + $0x8] sm:$0xfe] }
  0x26   :  { %v888_v17 = vmul.f32 %v1651_v49, %v1466_v32  ;;  %v409_v19 = vrot.slane %v343_v2, 1  ;;  %v515_v21 = vmul.f32 %v1627_v26, %v486_v59  ;;  %v1029_v36 = vrot.slane %v965_v6, 1  ;;  %v921_v41 = vld [vmem:[#allocation2 + $0x28] sm:$0xfe]  ;;  %v923_v47 = vld [vmem:[#allocation2 + $0x38] sm:$0x1] }
  0x27   :  { %v530_v0 = vadd.f32 %v514_v29, %v469_v62  ;;  %v718_v28 = vsel %vm404_vm2, %v716_v63, %v717_v1  ;;  %v1030_v39 = vrot.slane %v967_v7, 1  ;;  %v1680_v29 = vrot.slane %v1282_v15, %v1549_v54  ;;  %v299_v62 = vld [vmem:[#allocation2 + $0x20] sm:$0xfe]  ;;  %v798_v2 = vld [vmem:[#allocation2 + $0x28] sm:$0xff]  ;;  %v860_v6 = vld [vmem:[#allocation3 + $0x18] sm:$0xff] }
  0x28   :  { %v410_v44 = vsel %vm404_vm2, %v408_v13, %v409_v19  ;;  %v576_v45 = vmul.f32 %v1630_v27, %v547_v50  ;;  %v1685_v48 = vrot.slane %v1285_v43, %v1549_v54  ;;  %v1690_v55 = vrot.slane %v1283_v25, %v1549_v54 }
  0x29   :  { %v591_v42 = vadd.f32 %v575_v46, %v530_v0  ;;  %v470_v51 = vadd.f32 %v410_v44, %v280_v10  ;;  %v653_v52 = vmul.f32 %v1680_v29, %v608_v22  ;;  %v655_v53 = vmul.f32 %v1680_v29, %v610_v23  ;;  %v301_v10 = vld [vmem:[#allocation2 + $0x30] sm:$0x1] }
  0x2a   :  { %v1031_v58 = vsel %vm404_vm2, %v1029_v36, %v1030_v39  ;;  %v1694_v46 = vrot.slane %v1284_v34, %v1549_v54  ;;  %v966_v59 = vmul.f32 %v1685_v48, %v921_v41  ;;  %v968_v7 = vmul.f32 %v1685_v48, %v923_v47  ;;  %v487_v34 = vld [vmem:[%s2268_s5 + $0x20] sm:$0xff]  ;;  %v548_v39 = vld [vmem:[%s2269_s6 + $0x10] sm:$0xff] }
  0x2b   :  { %v780_v15 = vadd.f32 %v718_v28, %v591_v42  ;;  %v531_v63 = vadd.f32 %v515_v21, %v470_v51  ;;  %v719_v43 = vrot.slane %v653_v52, 1  ;;  %v720_v1 = vrot.slane %v655_v53, 1  ;;  %v924_v41 = vld [vmem:[#allocation2 + $0x40] sm:$0xfe] }
  0x2c   :  { %v1032_v25 = vrot.slane %v966_v59, 1  ;;  %v220_v50 = vmul.f32 %v1570_v60, %v1353_v4  ;;  %v265_v54 = vmul.f32 %v1573_v61, %v1466_v32  ;;  %v1033_v21 = vrot.slane %v968_v7, 1  ;;  %v613_v4 = vld [vmem:[%s2268_s5 + $0x30] sm:$0x1] }
  0x2d   :  { %v842_v13 = vadd.f32 %v826_v56, %v780_v15  ;;  %v592_v0 = vadd.f32 %v576_v45, %v531_v63  ;;  %v721_v19 = vsel %vm404_vm2, %v719_v43, %v720_v1  ;;  %v344_v22 = vmul.f32 %v1592_v9, %v299_v62  ;;  %v611_v56 = vld [vmem:[%s2268_s5 + $0x20] sm:$0xfe]  ;;  %v926_v15 = vld [vmem:[#allocation2 + $0x50] sm:$0x1]  ;;  %v300_v1 = vld [vmem:[#allocation2 + $0x28] sm:$0xfe] }
  0x2e   :  { %v827_v32 = vmul.f32 %v1690_v55, %v798_v2  ;;  %v889_v28 = vmul.f32 %v1694_v46, %v860_v6  ;;  %v346_v36 = vmul.f32 %v1592_v9, %v301_v10  ;;  %v281_v44 = vadd.f32 %v265_v54, %v220_v50  ;;  %v302_v50 = vld [vmem:[#allocation2 + $0x38] sm:$0x1] }
  0x2f   :  { %v904_v23 = vadd.f32 %v888_v17, %v842_v13  ;;  %v781_v42 = vadd.f32 %v721_v19, %v592_v0  ;;  %v411_v45 = vrot.slane %v344_v22, 1  ;;  %v516_v47 = vmul.f32 %v1598_v11, %v487_v34 }
  0x30   :  { %v412_v52 = vrot.slane %v346_v36, 1  ;;  %v656_v17 = vmul.f32 %v1634_v30, %v611_v56  ;;  %v658_v53 = vmul.f32 %v1634_v30, %v613_v4  ;;  %v1034_v62 = vsel %vm404_vm2, %v1032_v25, %v1033_v21  ;;  %v488_v4 = vld [vmem:[%s2268_s5 + $0x28] sm:$0xff] }
  0x31   :  { %v1720_v51 = vadd.f32 %v1031_v58, %v904_v23  ;;  %v843_v59 = vadd.f32 %v827_v32, %v781_v42  ;;  %v577_v63 = vmul.f32 %v1604_v14, %v548_v39  ;;  %v969_v43 = vmul.f32 %v1657_v57, %v924_v41  ;;  %v549_v23 = vld [vmem:[%s2269_s6 + $0x18] sm:$0xff] }
  0x32   :  { %v413_v58 = vsel %vm404_vm2, %v411_v45, %v412_v52  ;;  %v722_v7 = vrot.slane %v656_v17, 1  ;;  %v723_v10 = vrot.slane %v658_v53, 1  ;;  %v828_v13 = vmul.f32 %v1637_v31, %v1370_v8  ;;  %v925_v52 = vld [vmem:[#allocation2 + $0x48] sm:$0xfe] }
  0x33   :  { %1109 = vst [vmem:[%s2270_s7] sm:$0xff] %v1720_v51  ;;  %v905_v54 = vadd.f32 %v889_v28, %v843_v59  ;;  %v471_v25 = vadd.f32 %v413_v58, %v281_v44  ;;  %v890_v34 = vmul.f32 %v1651_v49, %v1471_v33  ;;  %v971_v0 = vmul.f32 %v1657_v57, %v926_v15 }
  0x34   :  { %v1035_v19 = vrot.slane %v969_v43, 1  ;;  %v221_v21 = vmul.f32 %v798_v2, %v1582_v3  ;;  %v266_v22 = vmul.f32 %v860_v6, %v1585_v5  ;;  %v345_v56 = vmul.f32 %v1613_v18, %v300_v1  ;;  %v612_v2 = vld [vmem:[%s2268_s5 + $0x28] sm:$0xfe]  ;;  %v614_v6 = vld [vmem:[%s2268_s5 + $0x38] sm:$0x1] }
  0x35   :  { %v1094_v32 = vadd.f32 %v1034_v62, %v905_v54  ;;  %v532_v28 = vadd.f32 %v516_v47, %v471_v25  ;;  %v1036_v36 = vrot.slane %v971_v0, 1  ;;  %v347_v39 = vmul.f32 %v1613_v18, %v302_v50  ;;  %v1758_v47 = vld [vmem:[#allocation2 + $0x48] sm:$0xff]  ;;  %v927_v62 = vld [vmem:[#allocation2 + $0x58] sm:$0x1]  ;;  %v303_v25 = vld [vmem:[#allocation2 + $0x40] sm:$0xfe] }
  0x36   :  { %v1755_v41 = vmul.f32 %v1720_v51, %v1720_v51  ;;  %v724_v42 = vsel %vm404_vm2, %v722_v7, %v723_v10  ;;  %v282_v44 = vadd.f32 %v266_v22, %v221_v21  ;;  %v414_v45 = vrot.slane %v345_v56, 1 }
  0x37   :  { %1110 = vst.msk [vmem:[%s2270_s7 + $0x8] sm:$0xff] %vm111_vm0, %v1094_v32  ;;  %v1183_v17 = vmul.f32 %v1094_v32, %v1094_v32  ;;  %v593_v53 = vadd.f32 %v577_v63, %v532_v28  ;;  %v517_v15 = vmul.f32 %v1627_v26, %v488_v4  ;;  %v578_v59 = vmul.f32 %v1630_v27, %v549_v23  ;;  %v305_v4 = vld [vmem:[#allocation2 + $0x50] sm:$0x1] }
  0x38   :  { %v1767_v43 = vsel %vm111_vm0, %v1094_v32, 0.0  ;;  %v415_v1 = vrot.slane %v347_v39, 1  ;;  %v657_v58 = vmul.f32 %v1680_v29, %v612_v2  ;;  %v659_v7 = vmul.f32 %v1680_v29, %v614_v6  ;;  %v862_v39 = vld [vmem:[#allocation3 + $0x28] sm:$0xff] }
  0x39   :  { %v782_v10 = vadd.f32 %v724_v42, %v593_v53  ;;  %v1037_v50 = vsel %vm404_vm2, %v1035_v19, %v1036_v36  ;;  %v829_v54 = vmul.f32 %v1690_v55, %v1758_v47  ;;  %v970_v63 = vmul.f32 %v1685_v48, %v925_v52  ;;  %v489_v36 = vld [vmem:[%s2268_s5 + $0x40] sm:$0xff] }
  0x3a   :  { %v416_v0 = vsel %vm404_vm2, %v414_v45, %v415_v1  ;;  %v725_v21 = vrot.slane %v657_v58, 1  ;;  %v726_v22 = vrot.slane %v659_v7, 1  ;;  %v972_v56 = vmul.f32 %v1685_v48, %v927_v62  ;;  %v550_v53 = vld [vmem:[%s2269_s6 + $0x20] sm:$0xff] }
  0x3b   :  { %v1778_v23 = vsel %vm111_vm0, %v1183_v17, 0.0  ;;  %v844_v32 = vadd.f32 %v828_v13, %v782_v10  ;;  %v472_v28 = vadd.f32 %v416_v0, %v282_v44  ;;  %v222_v19 = vmul.f32 %v1570_v60, %v1370_v8  ;;  %v615_v13 = vld [vmem:[%s2268_s5 + $0x40] sm:$0xfe]  ;;  %v930_v0 = vld [vmem:[#allocation2 + $0x70] sm:$0x1] }
  0x3c   :  { %v1038_v2 = vrot.slane %v970_v63, 1  ;;  %v1039_v6 = vrot.slane %v972_v56, 1  ;;  %v267_v42 = vmul.f32 %v1573_v61, %v1471_v33  ;;  %v348_v45 = vmul.f32 %v1592_v9, %v303_v25  ;;  %v617_v33 = vld [vmem:[%s2268_s5 + $0x50] sm:$0x1]  ;;  %v928_v62 = vld [vmem:[#allocation2 + $0x60] sm:$0xfe] }
  0x3d   :  { %v906_v44 = vadd.f32 %v890_v34, %v844_v32  ;;  %v533_v52 = vadd.f32 %v517_v15, %v472_v28  ;;  %v891_v8 = vmul.f32 %v1694_v46, %v862_v39  ;;  %v350_v17 = vmul.f32 %v1592_v9, %v305_v4 }
  0x3e   :  { %v727_v1 = vsel %vm404_vm2, %v725_v21, %v726_v22  ;;  %v283_v58 = vadd.f32 %v267_v42, %v222_v19  ;;  %v417_v7 = vrot.slane %v348_v45, 1  ;;  %v518_v34 = vmul.f32 %v1598_v11, %v489_v36  ;;  %v304_v42 = vld [vmem:[#allocation2 + $0x48] sm:$0xfe]  ;;  %v306_v45 = vld [vmem:[#allocation2 + $0x58] sm:$0x1] }
  0x3f   :  { %v1095_v15 = vadd.f32 %v1037_v50, %v906_v44  ;;  %v594_v10 = vadd.f32 %v578_v59, %v533_v52  ;;  %v418_v63 = vrot.slane %v350_v17, 1  ;;  %v660_v25 = vmul.f32 %v1634_v30, %v615_v13  ;;  %v490_v17 = vld [vmem:[%s2268_s5 + $0x48] sm:$0xff] }
  0x40   :  { %v1040_v56 = vsel %vm404_vm2, %v1038_v2, %v1039_v6  ;;  %v579_v4 = vmul.f32 %v1604_v14, %v550_v53  ;;  %v662_v32 = vmul.f32 %v1634_v30, %v617_v33  ;;  %v973_v28 = vmul.f32 %v1657_v57, %v928_v62 }
  0x41   :  { %1111 = vst [vmem:[%s2270_s7 + $0x10] sm:$0xff] %v1095_v15  ;;  %v1810_v21 = vadd.f32 %v1095_v15, %v1720_v51  ;;  %v1184_v59 = vmul.f32 %v1095_v15, %v1095_v15  ;;  %v783_v50 = vadd.f32 %v727_v1, %v594_v10  ;;  %v419_v22 = vsel %vm404_vm2, %v417_v7, %v418_v63  ;;  %v551_v15 = vld [vmem:[%s2269_s6 + $0x28] sm:$0xff] }
  0x42   :  { %v473_v19 = vadd.f32 %v419_v22, %v283_v58  ;;  %v728_v36 = vrot.slane %v660_v25, 1  ;;  %v729_v2 = vrot.slane %v662_v32, 1  ;;  %v975_v6 = vmul.f32 %v1657_v57, %v930_v0 }
  0x43   :  { %v1815_v13 = vadd.f32 %v1184_v59, %v1755_v41  ;;  %v845_v44 = vadd.f32 %v829_v54, %v783_v50  ;;  %v830_v52 = vmul.f32 %v1637_v31, %v1388_v12  ;;  %v223_v51 = vmul.f32 %v1758_v47, %v1582_v3  ;;  %v616_v41 = vld [vmem:[%s2268_s5 + $0x48] sm:$0xfe] }
  0x44   :  { %v534_v53 = vadd.f32 %v518_v34, %v473_v19  ;;  %v1041_v33 = vrot.slane %v973_v28, 1  ;;  %v1042_v62 = vrot.slane %v975_v6, 1  ;;  %v268_v1 = vmul.f32 %v862_v39, %v1585_v5  ;;  %v618_v34 = vld [vmem:[%s2268_s5 + $0x58] sm:$0x1] }
  0x45   :  { %v907_v54 = vadd.f32 %v891_v8, %v845_v44  ;;  %v730_v58 = vsel %vm404_vm2, %v728_v36, %v729_v2  ;;  %v349_v7 = vmul.f32 %v1613_v18, %v304_v42  ;;  %v351_v47 = vmul.f32 %v1613_v18, %v306_v45  ;;  %v929_v36 = vld [vmem:[#allocation2 + $0x68] sm:$0xfe] }
  0x46   :  { %v595_v39 = vadd.f32 %v579_v4, %v534_v53  ;;  %v892_v10 = vmul.f32 %v1651_v49, %v1479_v35  ;;  %v284_v63 = vadd.f32 %v268_v1, %v223_v51  ;;  %v519_v8 = vmul.f32 %v1627_v26, %v490_v17  ;;  %v931_v4 = vld [vmem:[#allocation2 + $0x78] sm:$0x1]  ;;  %v307_v53 = vld [vmem:[#allocation2 + $0x60] sm:$0xfe] }
  0x47   :  { %v1096_v25 = vadd.f32 %v1040_v56, %v907_v54  ;;  %v420_v0 = vrot.slane %v349_v7, 1  ;;  %v421_v32 = vrot.slane %v351_v47, 1  ;;  %v661_v28 = vmul.f32 %v1680_v29, %v616_v41  ;;  %v309_v54 = vld [vmem:[#allocation2 + $0x70] sm:$0x1]  ;;  %v491_v47 = vld [vmem:[%s2268_s5 + $0x60] sm:$0xff] }
  0x48   :  { %v784_v59 = vadd.f32 %v730_v58, %v595_v39  ;;  %v1043_v50 = vsel %vm404_vm2, %v1041_v33, %v1042_v62  ;;  %v580_v22 = vmul.f32 %v1630_v27, %v551_v15  ;;  %v663_v19 = vmul.f32 %v1680_v29, %v618_v34  ;;  %v802_v15 = vld [vmem:[#allocation2 + $0x68] sm:$0xff]  ;;  %v864_v34 = vld [vmem:[#allocation3 + $0x38] sm:$0xff] }
  0x49   :  { %1112 = vst.msk [vmem:[%s2270_s7 + $0x18] sm:$0xff] %vm111_vm0, %v1096_v25  ;;  %v1139_v56 = vsel %vm111_vm0, %v1096_v25, 0.0  ;;  %v1185_v2 = vmul.f32 %v1096_v25, %v1096_v25  ;;  %v422_v6 = vsel %vm404_vm2, %v420_v0, %v421_v32  ;;  %v731_v42 = vrot.slane %v661_v28, 1  ;;  %v552_v32 = vld [vmem:[%s2269_s6 + $0x30] sm:$0xff]  ;;  %v619_v28 = vld [vmem:[%s2268_s5 + $0x60] sm:$0xfe] }
  0x4a   :  { %v1851_v45 = vadd.f32 %v1139_v56, %v1767_v43  ;;  %v846_v44 = vadd.f32 %v830_v52, %v784_v59  ;;  %v474_v51 = vadd.f32 %v422_v6, %v284_v63  ;;  %v732_v17 = vrot.slane %v663_v19, 1 }
  0x4b   :  { %v1212_v33 = vsel %vm111_vm0, %v1185_v2, 0.0  ;;  %v974_v62 = vmul.f32 %v1685_v48, %v929_v36  ;;  %v976_v1 = vmul.f32 %v1685_v48, %v931_v4  ;;  %v224_v41 = vmul.f32 %v1570_v60, %v1388_v12  ;;  %v932_v36 = vld [vmem:[#allocation2 + $0x80] sm:$0xfe] }
  0x4c   :  { %v1859_v58 = vadd.f32 %v1212_v33, %v1778_v23  ;;  %v908_v7 = vadd.f32 %v892_v10, %v846_v44  ;;  %v535_v43 = vadd.f32 %v519_v8, %v474_v51  ;;  %v733_v52 = vsel %vm404_vm2, %v731_v42, %v732_v17  ;;  %v934_v42 = vld [vmem:[#allocation2 + $0x90] sm:$0x1] }
  0x4d   :  { %v1044_v39 = vrot.slane %v974_v62, 1  ;;  %v1045_v63 = vrot.slane %v976_v1, 1  ;;  %v269_v25 = vmul.f32 %v1573_v61, %v1479_v35  ;;  %v352_v12 = vmul.f32 %v1592_v9, %v307_v53  ;;  %v621_v35 = vld [vmem:[%s2268_s5 + $0x70] sm:$0x1] }
  0x4e   :  { %v1097_v0 = vadd.f32 %v1043_v50, %v908_v7  ;;  %v596_v23 = vadd.f32 %v580_v22, %v535_v43  ;;  %v831_v10 = vmul.f32 %v1690_v55, %v802_v15  ;;  %v354_v8 = vmul.f32 %v1592_v9, %v309_v54 }
  0x4f   :  { %v893_v59 = vmul.f32 %v1694_v46, %v864_v34  ;;  %v285_v50 = vadd.f32 %v269_v25, %v224_v41  ;;  %v423_v22 = vrot.slane %v352_v12, 1  ;;  %v520_v19 = vmul.f32 %v1598_v11, %v491_v47  ;;  %v308_v41 = vld [vmem:[#allocation2 + $0x68] sm:$0xfe]  ;;  %v310_v47 = vld [vmem:[#allocation2 + $0x78] sm:$0x1] }
  0x50   :  { %1113 = vst [vmem:[%s2270_s7 + $0x20] sm:$0xff] %v1097_v0  ;;  %v1885_v4 = vadd.f32 %v1810_v21, %v1097_v0  ;;  %v1186_v56 = vmul.f32 %v1097_v0, %v1097_v0  ;;  %v785_v2 = vadd.f32 %v733_v52, %v596_v23  ;;  %v424_v6 = vrot.slane %v354_v8, 1  ;;  %v492_v12 = vld [vmem:[%s2268_s5 + $0x68] sm:$0xff] }
  0x51   :  { %v1046_v44 = vsel %vm404_vm2, %v1044_v39, %v1045_v63  ;;  %v581_v51 = vmul.f32 %v1604_v14, %v552_v32  ;;  %v664_v17 = vmul.f32 %v1634_v30, %v619_v28  ;;  %v666_v53 = vmul.f32 %v1634_v30, %v621_v35  ;;  %v620_v32 = vld [vmem:[%s2268_s5 + $0x68] sm:$0xfe] }
  0x52   :  { %v1892_v33 = vadd.f32 %v1815_v13, %v1186_v56  ;;  %v847_v62 = vadd.f32 %v831_v10, %v785_v2  ;;  %v425_v1 = vsel %vm404_vm2, %v423_v22, %v424_v6  ;;  %v977_v21 = vmul.f32 %v1657_v57, %v932_v36  ;;  %v553_v56 = vld [vmem:[%s2269_s6 + $0x38] sm:$0xff] }
  0x53   :  { %v475_v54 = vadd.f32 %v425_v1, %v285_v50  ;;  %v734_v7 = vrot.slane %v664_v17, 1  ;;  %v735_v43 = vrot.slane %v666_v53, 1  ;;  %v979_v52 = vmul.f32 %v1657_v57, %v934_v42  ;;  %v933_v1 = vld [vmem:[#allocation2 + $0x88] sm:$0xfe] }
  0x54   :  { %v909_v39 = vadd.f32 %v893_v59, %v847_v62  ;;  %v832_v63 = vmul.f32 %v1637_v31, %v1404_v16  ;;  %v225_v25 = vmul.f32 %v802_v15, %v1582_v3  ;;  %v270_v13 = vmul.f32 %v864_v34, %v1585_v5  ;;  %v622_v59 = vld [vmem:[%s2268_s5 + $0x78] sm:$0x1] }
  0x55   :  { %v536_v0 = vadd.f32 %v520_v19, %v475_v54  ;;  %v1047_v23 = vrot.slane %v977_v21, 1  ;;  %v1048_v10 = vrot.slane %v979_v52, 1  ;;  %v353_v8 = vmul.f32 %v1613_v18, %v308_v41  ;;  %v935_v21 = vld [vmem:[#allocation2 + $0x98] sm:$0x1]  ;;  %v311_v52 = vld [vmem:[#allocation2 + $0x80] sm:$0xfe] }
  0x56   :  { %v1098_v28 = vadd.f32 %v1046_v44, %v909_v39  ;;  %v736_v35 = vsel %vm404_vm2, %v734_v7, %v735_v43  ;;  %v894_v15 = vmul.f32 %v1651_v49, %v1492_v38  ;;  %v355_v34 = vmul.f32 %v1613_v18, %v310_v47 }
  0x57   :  { %v597_v50 = vadd.f32 %v581_v51, %v536_v0  ;;  %v286_v22 = vadd.f32 %v270_v13, %v225_v25  ;;  %v426_v19 = vrot.slane %v353_v8, 1  ;;  %v521_v36 = vmul.f32 %v1627_v26, %v492_v12  ;;  %v313_v13 = vld [vmem:[#allocation2 + $0x90] sm:$0x1]  ;;  %v804_v12 = vld [vmem:[#allocation2 + $0x88] sm:$0xff] }
  0x58   :  { %1114 = vst.msk [vmem:[%s2270_s7 + $0x28] sm:$0xff] %vm111_vm0, %v1098_v28  ;;  %v1141_v2 = vsel %vm111_vm0, %v1098_v28, 0.0  ;;  %v1187_v6 = vmul.f32 %v1098_v28, %v1098_v28  ;;  %v427_v42 = vrot.slane %v355_v34, 1  ;;  %v665_v44 = vmul.f32 %v1680_v29, %v620_v32  ;;  %v623_v34 = vld [vmem:[%s2268_s5 + $0x80] sm:$0xfe] }
  0x59   :  { %v1926_v51 = vadd.f32 %v1141_v2, %v1851_v45  ;;  %v786_v17 = vadd.f32 %v736_v35, %v597_v50  ;;  %v1049_v53 = vsel %vm404_vm2, %v1047_v23, %v1048_v10  ;;  %v667_v62 = vmul.f32 %v1680_v29, %v622_v59  ;;  %v493_v35 = vld [vmem:[%s2268_s5 + $0x80] sm:$0xff] }
  0x5a   :  { %v1214_v41 = vsel %vm111_vm0, %v1187_v6, 0.0  ;;  %v428_v54 = vsel %vm404_vm2, %v426_v19, %v427_v42  ;;  %v582_v7 = vmul.f32 %v1630_v27, %v553_v56  ;;  %v737_v43 = vrot.slane %v665_v44, 1  ;;  %v554_v6 = vld [vmem:[%s2269_s6 + $0x40] sm:$0xff] }
  0x5b   :  { %v1934_v47 = vadd.f32 %v1214_v41, %v1859_v58  ;;  %v848_v45 = vadd.f32 %v832_v63, %v786_v17  ;;  %v476_v39 = vadd.f32 %v428_v54, %v286_v22  ;;  %v738_v25 = vrot.slane %v667_v62, 1  ;;  %v936_v54 = vld [vmem:[#allocation2 + $0xa0] sm:$0xfe] }
  0x5c   :  { %v978_v0 = vmul.f32 %v1685_v48, %v933_v1  ;;  %v980_v23 = vmul.f32 %v1685_v48, %v935_v21  ;;  %v226_v10 = vmul.f32 %v1570_v60, %v1404_v16  ;;  %v271_v8 = vmul.f32 %v1573_v61, %v1492_v38 }
  0x5d   :  { %v910_v32 = vadd.f32 %v894_v15, %v848_v45  ;;  %v537_v28 = vadd.f32 %v521_v36, %v476_v39  ;;  %v833_v58 = vmul.f32 %v1690_v55, %v804_v12  ;;  %v356_v63 = vmul.f32 %v1592_v9, %v311_v52  ;;  %v625_v15 = vld [vmem:[%s2268_s5 + $0x90] sm:$0x1]  ;;  %v866_v36 = vld [vmem:[#allocation3 + $0x48] sm:$0xff] }
  0x5e   :  { %v739_v59 = vsel %vm404_vm2, %v737_v43, %v738_v25  ;;  %v1050_v16 = vrot.slane %v978_v0, 1  ;;  %v1051_v50 = vrot.slane %v980_v23, 1  ;;  %v358_v38 = vmul.f32 %v1592_v9, %v313_v13  ;;  %v312_v25 = vld [vmem:[#allocation2 + $0x88] sm:$0xfe] }
  0x5f   :  { %v1099_v22 = vadd.f32 %v1049_v53, %v910_v32  ;;  %v598_v19 = vadd.f32 %v582_v7, %v537_v28  ;;  %v287_v56 = vadd.f32 %v271_v8, %v226_v10  ;;  %v429_v2 = vrot.slane %v356_v63, 1  ;;  %v938_v7 = vld [vmem:[#allocation2 + $0xb0] sm:$0x1]  ;;  %v314_v10 = vld [vmem:[#allocation2 + $0x98] sm:$0x1] }
  0x60   :  { %v895_v42 = vmul.f32 %v1694_v46, %v866_v36  ;;  %v430_v44 = vrot.slane %v358_v38, 1  ;;  %v522_v17 = vmul.f32 %v1598_v11, %v493_v35  ;;  %v668_v62 = vmul.f32 %v1634_v30, %v623_v34 }
  0x61   :  { %1115 = vst [vmem:[%s2270_s7 + $0x30] sm:$0xff] %v1099_v22  ;;  %v1965_v53 = vadd.f32 %v1885_v4, %v1099_v22  ;;  %v1188_v1 = vmul.f32 %v1099_v22, %v1099_v22  ;;  %v787_v21 = vadd.f32 %v739_v59, %v598_v19  ;;  %v670_v41 = vmul.f32 %v1634_v30, %v625_v15 }
  0x62   :  { %v1052_v43 = vsel %vm404_vm2, %v1050_v16, %v1051_v50  ;;  %v431_v52 = vsel %vm404_vm2, %v429_v2, %v430_v44  ;;  %v583_v45 = vmul.f32 %v1604_v14, %v554_v6  ;;  %v740_v39 = vrot.slane %v668_v62, 1  ;;  %v624_v16 = vld [vmem:[%s2268_s5 + $0x88] sm:$0xfe] }
  0x63   :  { %v1972_v13 = vadd.f32 %v1892_v33, %v1188_v1  ;;  %v849_v0 = vadd.f32 %v833_v58, %v787_v21  ;;  %v477_v4 = vadd.f32 %v431_v52, %v287_v56  ;;  %v741_v23 = vrot.slane %v670_v41, 1  ;;  %v494_v58 = vld [vmem:[%s2268_s5 + $0x88] sm:$0xff] }
  0x64   :  { %v981_v8 = vmul.f32 %v1657_v57, %v936_v54  ;;  %v983_v32 = vmul.f32 %v1657_v57, %v938_v7  ;;  %v227_v28 = vmul.f32 %v804_v12, %v1582_v3  ;;  %v272_v63 = vmul.f32 %v866_v36, %v1585_v5  ;;  %v555_v2 = vld [vmem:[%s2269_s6 + $0x48] sm:$0xff]  ;;  %v939_v7 = vld [vmem:[#allocation2 + $0xb8] sm:$0x1] }
  0x65   :  { %v911_v35 = vadd.f32 %v895_v42, %v849_v0  ;;  %v538_v34 = vadd.f32 %v522_v17, %v477_v4  ;;  %v834_v59 = vmul.f32 %v1637_v31, %v1421_v20  ;;  %v357_v33 = vmul.f32 %v1613_v18, %v312_v25  ;;  %v626_v20 = vld [vmem:[%s2268_s5 + $0x98] sm:$0x1]  ;;  %v937_v54 = vld [vmem:[#allocation2 + $0xa8] sm:$0xfe] }
  0x66   :  { %v742_v50 = vsel %vm404_vm2, %v740_v39, %v741_v23  ;;  %v1053_v12 = vrot.slane %v981_v8, 1  ;;  %v1054_v38 = vrot.slane %v983_v32, 1  ;;  %v359_v15 = vmul.f32 %v1613_v18, %v314_v10  ;;  %v200_v39 = vld [vmem:[#allocation2 + $0xa0] sm:$0xff]  ;;  %v806_v10 = vld [vmem:[#allocation2 + $0xa8] sm:$0xff]  ;;  %v244_v8 = vld [vmem:[#allocation3 + $0x50] sm:$0xff] }
  0x67   :  { %v1100_v22 = vadd.f32 %v1052_v43, %v911_v35  ;;  %v599_v19 = vadd.f32 %v583_v45, %v538_v34  ;;  %v288_v36 = vadd.f32 %v272_v63, %v227_v28  ;;  %v432_v56 = vrot.slane %v357_v33, 1  ;;  %v315_v32 = vld [vmem:[#allocation2 + $0xa0] sm:$0xfe]  ;;  %v317_v33 = vld [vmem:[#allocation2 + $0xb0] sm:$0x1] }
  0x68   :  { %v896_v6 = vmul.f32 %v1651_v49, %v1500_v40  ;;  %v433_v42 = vrot.slane %v359_v15, 1  ;;  %v523_v44 = vmul.f32 %v1627_v26, %v494_v58  ;;  %v669_v17 = vmul.f32 %v1680_v29, %v624_v16 }
  0x69   :  { %1116 = vst.msk [vmem:[%s2270_s7 + $0x38] sm:$0xff] %vm111_vm0, %v1100_v22  ;;  %v1189_v62 = vmul.f32 %v1100_v22, %v1100_v22  ;;  %v788_v1 = vadd.f32 %v742_v50, %v599_v19  ;;  %v1055_v21 = vsel %vm404_vm2, %v1053_v12, %v1054_v38  ;;  %v671_v41 = vmul.f32 %v1680_v29, %v626_v20  ;;  %v495_v50 = vld [vmem:[%s2268_s5 + $0xa0] sm:$0xff]  ;;  %v868_v12 = vld [vmem:[#allocation3 + $0x58] sm:$0xff] }
  0x6a   :  { %v1143_v40 = vsel %vm111_vm0, %v1100_v22, 0.0  ;;  %v434_v43 = vsel %vm404_vm2, %v432_v56, %v433_v42  ;;  %v584_v52 = vmul.f32 %v1630_v27, %v555_v2  ;;  %v743_v45 = vrot.slane %v669_v17, 1  ;;  %v627_v42 = vld [vmem:[%s2268_s5 + $0xa0] sm:$0xfe] }
  0x6b   :  { %v2009_v25 = vadd.f32 %v1143_v40, %v1926_v51  ;;  %v850_v0 = vadd.f32 %v834_v59, %v788_v1  ;;  %v478_v4 = vadd.f32 %v434_v43, %v288_v36  ;;  %v744_v23 = vrot.slane %v671_v41, 1  ;;  %v942_v43 = vld [vmem:[#allocation2 + $0xd0] sm:$0x1] }
  0x6c   :  { %v1216_v28 = vsel %vm111_vm0, %v1189_v62, 0.0  ;;  %v835_v63 = vmul.f32 %v1690_v55, %v806_v10  ;;  %v982_v35 = vmul.f32 %v1685_v48, %v937_v54  ;;  %v984_v34 = vmul.f32 %v1685_v48, %v939_v7 }
  0x6d   :  { %v912_v58 = vadd.f32 %v896_v6, %v850_v0  ;;  %v539_v16 = vadd.f32 %v523_v44, %v478_v4  ;;  %v745_v51 = vsel %vm404_vm2, %v743_v45, %v744_v23  ;;  %v228_v59 = vmul.f32 %v1570_v60, %v200_v39  ;;  %v556_v6 = vld [vmem:[%s2269_s6 + $0x50] sm:$0xff] }
  0x6e   :  { %v1056_v38 = vrot.slane %v982_v35, 1  ;;  %v1057_v15 = vrot.slane %v984_v34, 1  ;;  %v273_v20 = vmul.f32 %v1573_v61, %v244_v8  ;;  %v360_v22 = vmul.f32 %v1592_v9, %v315_v32  ;;  %v629_v44 = vld [vmem:[%s2268_s5 + $0xb0] sm:$0x1]  ;;  %v316_v32 = vld [vmem:[#allocation2 + $0xa8] sm:$0xfe] }
  0x6f   :  { %v2023_v19 = vadd.f32 %v1216_v28, %v1934_v47  ;;  %v1101_v36 = vadd.f32 %v1055_v21, %v912_v58  ;;  %v600_v56 = vadd.f32 %v584_v52, %v539_v16  ;;  %v362_v2 = vmul.f32 %v1592_v9, %v317_v33  ;;  %v940_v21 = vld [vmem:[#allocation2 + $0xc0] sm:$0xfe]  ;;  %v318_v16 = vld [vmem:[#allocation2 + $0xb8] sm:$0x1] }
  0x70   :  { %v897_v17 = vmul.f32 %v1694_v46, %v868_v12  ;;  %v289_v47 = vadd.f32 %v273_v20, %v228_v59  ;;  %v435_v62 = vrot.slane %v360_v22, 1  ;;  %v524_v1 = vmul.f32 %v1598_v11, %v495_v50  ;;  %v2052_v33 = vld [vmem:[#allocation2 + $0xc0] sm:$0xff]  ;;  %v496_v50 = vld [vmem:[%s2268_s5 + $0xa8] sm:$0xff] }
  0x71   :  { %1117 = vst [vmem:[%s2270_s7 + $0x40] sm:$0xff] %v1101_v36  ;;  %v2041_v41 = vadd.f32 %v1965_v53, %v1101_v36  ;;  %v1190_v54 = vmul.f32 %v1101_v36, %v1101_v36  ;;  %v789_v7 = vadd.f32 %v745_v51, %v600_v56  ;;  %v436_v40 = vrot.slane %v362_v2, 1  ;;  %v628_v56 = vld [vmem:[%s2268_s5 + $0xa8] sm:$0xfe] }
  0x72   :  { %v1058_v52 = vsel %vm404_vm2, %v1056_v38, %v1057_v15  ;;  %v585_v45 = vmul.f32 %v1604_v14, %v556_v6  ;;  %v672_v39 = vmul.f32 %v1634_v30, %v627_v42  ;;  %v674_v0 = vmul.f32 %v1634_v30, %v629_v44  ;;  %v2062_v15 = vld [vmem:[#allocation3 + $0x60] sm:$0xff]  ;;  %v630_v42 = vld [vmem:[%s2268_s5 + $0xb8] sm:$0x1] }
  0x73   :  { %v2048_v4 = vadd.f32 %v1972_v13, %v1190_v54  ;;  %v851_v23 = vadd.f32 %v835_v63, %v789_v7  ;;  %v437_v8 = vsel %vm404_vm2, %v435_v62, %v436_v40  ;;  %v985_v53 = vmul.f32 %v1657_v57, %v940_v21 }
  0x74   :  { %v479_v28 = vadd.f32 %v437_v8, %v289_v47  ;;  %v746_v35 = vrot.slane %v672_v39, 1  ;;  %v747_v34 = vrot.slane %v674_v0, 1  ;;  %v987_v58 = vmul.f32 %v1657_v57, %v942_v43  ;;  %v808_v43 = vld [vmem:[#allocation2 + $0xc8] sm:$0xff] }
  0x75   :  { %v913_v51 = vadd.f32 %v897_v17, %v851_v23  ;;  %v836_v59 = vmul.f32 %v1637_v31, %v2052_v33  ;;  %v229_v13 = vmul.f32 %v806_v10, %v1582_v3  ;;  %v274_v63 = vmul.f32 %v868_v12, %v1585_v5  ;;  %v870_v23 = vld [vmem:[#allocation3 + $0x68] sm:$0xff] }
  0x76   :  { %v540_v38 = vadd.f32 %v524_v1, %v479_v28  ;;  %v1059_v20 = vrot.slane %v985_v53, 1  ;;  %v1060_v22 = vrot.slane %v987_v58, 1  ;;  %v361_v36 = vmul.f32 %v1613_v18, %v316_v32  ;;  %v557_v1 = vld [vmem:[%s2269_s6 + $0x58] sm:$0xff]  ;;  %v941_v8 = vld [vmem:[#allocation2 + $0xc8] sm:$0xfe] }
  0x77   :  { %v1102_v2 = vadd.f32 %v1058_v52, %v913_v51  ;;  %v748_v10 = vsel %vm404_vm2, %v746_v35, %v747_v34  ;;  %v898_v12 = vmul.f32 %v1651_v49, %v2062_v15  ;;  %v363_v6 = vmul.f32 %v1613_v18, %v318_v16  ;;  %v943_v53 = vld [vmem:[#allocation2 + $0xd8] sm:$0x1]  ;;  %v320_v58 = vld [vmem:[#allocation2 + $0xc8] sm:$0xfe] }
  0x78   :  { %v601_v44 = vadd.f32 %v585_v45, %v540_v38  ;;  %v290_v17 = vadd.f32 %v274_v63, %v229_v13  ;;  %v438_v47 = vrot.slane %v361_v36, 1  ;;  %v525_v62 = vmul.f32 %v1627_v26, %v496_v50  ;;  %v322_v63 = vld [vmem:[#allocation2 + $0xd8] sm:$0x1] }
  0x79   :  { %1118 = vst.msk [vmem:[%s2270_s7 + $0x48] sm:$0xff] %vm111_vm0, %v1102_v2  ;;  %v1145_v21 = vsel %vm111_vm0, %v1102_v2, 0.0  ;;  %v1191_v54 = vmul.f32 %v1102_v2, %v1102_v2  ;;  %v439_v7 = vrot.slane %v363_v6, 1  ;;  %v673_v40 = vmul.f32 %v1680_v29, %v628_v56 }
  0x7a   :  { %v2086_v52 = vadd.f32 %v1145_v21, %v2009_v25  ;;  %v790_v45 = vadd.f32 %v748_v10, %v601_v44  ;;  %v1061_v39 = vsel %vm404_vm2, %v1059_v20, %v1060_v22  ;;  %v675_v0 = vmul.f32 %v1680_v29, %v630_v42 }
  0x7b   :  { %v1218_v32 = vsel %vm111_vm0, %v1191_v54, 0.0  ;;  %v440_v28 = vsel %vm404_vm2, %v438_v47, %v439_v7  ;;  %v586_v35 = vmul.f32 %v1630_v27, %v557_v1  ;;  %v749_v34 = vrot.slane %v673_v40, 1  ;;  %v559_v54 = vld [vmem:[%s2269_s6 + $0x68] sm:$0xff] }
  0x7c   :  { %v2094_v16 = vadd.f32 %v1218_v32, %v2023_v19  ;;  %v852_v25 = vadd.f32 %v836_v59, %v790_v45  ;;  %v480_v51 = vadd.f32 %v440_v28, %v290_v17  ;;  %v750_v13 = vrot.slane %v675_v0, 1  ;;  %v498_v19 = vld [vmem:[%s2268_s5 + $0xc8] sm:$0xff]  ;;  %v947_v28 = vld [vmem:[#allocation2 + $0xf8] sm:$0x1] }
  0x7d   :  { %v986_v50 = vmul.f32 %v1685_v48, %v941_v8  ;;  %v988_v38 = vmul.f32 %v1685_v48, %v943_v53  ;;  %v231_v20 = vmul.f32 %v808_v43, %v1582_v3  ;;  %v276_v22 = vmul.f32 %v870_v23, %v1585_v5  ;;  %v632_v59 = vld [vmem:[%s2268_s5 + $0xc8] sm:$0xfe] }
  0x7e   :  { %v914_v36 = vadd.f32 %v898_v12, %v852_v25  ;;  %v541_v56 = vadd.f32 %v525_v62, %v480_v51  ;;  %v837_v2 = vmul.f32 %v1690_v55, %v808_v43  ;;  %v365_v10 = vmul.f32 %v1613_v18, %v320_v58  ;;  %v634_v12 = vld [vmem:[%s2268_s5 + $0xd8] sm:$0x1]  ;;  %v945_v32 = vld [vmem:[#allocation2 + $0xe8] sm:$0xfe]  ;;  %v319_v51 = vld [vmem:[#allocation2 + $0xc0] sm:$0xfe] }
  0x7f   :  { %v751_v6 = vsel %vm404_vm2, %v749_v34, %v750_v13  ;;  %v1062_v42 = vrot.slane %v986_v50, 1  ;;  %v1063_v44 = vrot.slane %v988_v38, 1  ;;  %v367_v17 = vmul.f32 %v1613_v18, %v322_v63  ;;  %v810_v25 = vld [vmem:[#allocation2 + $0xe8] sm:$0xff]  ;;  %v872_v38 = vld [vmem:[#allocation3 + $0x78] sm:$0xff] }
  0x80   :  { %v1103_v47 = vadd.f32 %v1061_v39, %v914_v36  ;;  %v602_v62 = vadd.f32 %v586_v35, %v541_v56  ;;  %v292_v1 = vadd.f32 %v276_v22, %v231_v20  ;;  %v444_v21 = vrot.slane %v365_v10, 1  ;;  %v321_v20 = vld [vmem:[#allocation2 + $0xd0] sm:$0x1] }
  0x81   :  { %v899_v7 = vmul.f32 %v1694_v46, %v870_v23  ;;  %v445_v40 = vrot.slane %v367_v17, 1  ;;  %v527_v43 = vmul.f32 %v1627_v26, %v498_v19  ;;  %v677_v45 = vmul.f32 %v1680_v29, %v632_v59 }
  0x82   :  { %1119 = vst [vmem:[%s2270_s7 + $0x50] sm:$0xff] %v1103_v47  ;;  %v2123_v39 = vadd.f32 %v2041_v41, %v1103_v47  ;;  %v1192_v0 = vmul.f32 %v1103_v47, %v1103_v47  ;;  %v791_v8 = vadd.f32 %v751_v6, %v602_v62  ;;  %v679_v53 = vmul.f32 %v1680_v29, %v634_v12  ;;  %v497_v6 = vld [vmem:[%s2268_s5 + $0xc0] sm:$0xff]  ;;  %v633_v12 = vld [vmem:[%s2268_s5 + $0xd0] sm:$0x1] }
  0x83   :  { %v1064_v23 = vsel %vm404_vm2, %v1062_v42, %v1063_v44  ;;  %v446_v35 = vsel %vm404_vm2, %v444_v21, %v445_v40  ;;  %v588_v34 = vmul.f32 %v1630_v27, %v559_v54  ;;  %v755_v58 = vrot.slane %v677_v45, 1  ;;  %v631_v42 = vld [vmem:[%s2268_s5 + $0xc0] sm:$0xfe] }
  0x84   :  { %v2130_v13 = vadd.f32 %v2048_v4, %v1192_v0  ;;  %v853_v41 = vadd.f32 %v837_v2, %v791_v8  ;;  %v482_v63 = vadd.f32 %v446_v35, %v292_v1  ;;  %v756_v50 = vrot.slane %v679_v53, 1  ;;  %v558_v54 = vld [vmem:[%s2269_s6 + $0x60] sm:$0xff] }
  0x85   :  { %v990_v22 = vmul.f32 %v1685_v48, %v945_v32  ;;  %v992_v36 = vmul.f32 %v1685_v48, %v947_v28  ;;  %v230_v56 = vmul.f32 %v2052_v33, %v1570_v60  ;;  %v275_v10 = vmul.f32 %v2062_v15, %v1573_v61  ;;  %v944_v28 = vld [vmem:[#allocation2 + $0xe0] sm:$0xfe] }
  0x86   :  { %v915_v19 = vadd.f32 %v899_v7, %v853_v41  ;;  %v543_v59 = vadd.f32 %v527_v43, %v482_v63  ;;  %v839_v4 = vmul.f32 %v1690_v55, %v810_v25  ;;  %v364_v2 = vmul.f32 %v1592_v9, %v319_v51 }
  0x87   :  { %v757_v44 = vsel %vm404_vm2, %v755_v58, %v756_v50  ;;  %v901_v33 = vmul.f32 %v1694_v46, %v872_v38  ;;  %v1068_v17 = vrot.slane %v990_v22, 1  ;;  %v366_v15 = vmul.f32 %v1592_v9, %v321_v20  ;;  %v324_v22 = vld [vmem:[#allocation2 + $0xe8] sm:$0xfe] }
  0x88   :  { %v1104_v47 = vadd.f32 %v1064_v23, %v915_v19  ;;  %v604_v62 = vadd.f32 %v588_v34, %v543_v59  ;;  %v291_v1 = vadd.f32 %v275_v10, %v230_v56  ;;  %v441_v21 = vrot.slane %v364_v2, 1  ;;  %v946_v23 = vld [vmem:[#allocation2 + $0xf0] sm:$0x1]  ;;  %v809_v10 = vld [vmem:[#allocation2 + $0xe0] sm:$0xff]  ;;  %v326_v59 = vld [vmem:[#allocation2 + $0xf8] sm:$0x1] }
  0x89   :  { %v1069_v7 = vrot.slane %v992_v36, 1  ;;  %v442_v40 = vrot.slane %v366_v15, 1  ;;  %v526_v43 = vmul.f32 %v1598_v11, %v497_v6  ;;  %v676_v45 = vmul.f32 %v1634_v30, %v631_v42  ;;  %v500_v15 = vld [vmem:[%s2268_s5 + $0xe8] sm:$0xff] }
  0x8a   :  { %1120 = vst.msk [vmem:[%s2270_s7 + $0x58] sm:$0xff] %vm111_vm0, %v1104_v47  ;;  %v1147_v0 = vsel %vm111_vm0, %v1104_v47, 0.0  ;;  %v1193_v8 = vmul.f32 %v1104_v47, %v1104_v47  ;;  %v793_v53 = vadd.f32 %v757_v44, %v604_v62  ;;  %v678_v32 = vmul.f32 %v1634_v30, %v633_v12  ;;  %v871_v44 = vld [vmem:[#allocation3 + $0x70] sm:$0xff] }
  0x8b   :  { %v1148_v35 = vadd.f32 %v1147_v0, %v2086_v52  ;;  %v443_v34 = vsel %vm404_vm2, %v441_v21, %v442_v40  ;;  %v587_v58 = vmul.f32 %v1604_v14, %v558_v54  ;;  %v752_v51 = vrot.slane %v676_v45, 1  ;;  %v561_v40 = vld [vmem:[%s2269_s6 + $0x78] sm:$0xff] }
  0x8c   :  { %v1220_v41 = vsel %vm111_vm0, %v1193_v8, 0.0  ;;  %v855_v63 = vadd.f32 %v839_v4, %v793_v53  ;;  %v481_v50 = vadd.f32 %v443_v34, %v291_v1  ;;  %v753_v20 = vrot.slane %v678_v32, 1 }
  0x8d   :  { %v1221_v36 = vadd.f32 %v1220_v41, %v2094_v16  ;;  %v1070_v56 = vsel %vm404_vm2, %v1068_v17, %v1069_v7  ;;  %v989_v19 = vmul.f32 %v1657_v57, %v944_v28  ;;  %v991_v52 = vmul.f32 %v1657_v57, %v946_v23  ;;  %v949_v28 = vld [vmem:[#allocation2 + $0x108] sm:$0xfe]  ;;  %v951_v23 = vld [vmem:[#allocation2 + $0x118] sm:$0x1] }
  0x8e   :  { %v917_v2 = vadd.f32 %v901_v33, %v855_v63  ;;  %v542_v6 = vadd.f32 %v526_v43, %v481_v50  ;;  %v754_v42 = vsel %vm404_vm2, %v752_v51, %v753_v20  ;;  %v233_v4 = vmul.f32 %v810_v25, %v1582_v3  ;;  %v636_v3 = vld [vmem:[%s2268_s5 + $0xe8] sm:$0xfe]  ;;  %v638_v25 = vld [vmem:[%s2268_s5 + $0xf8] sm:$0x1]  ;;  %v323_v50 = vld [vmem:[#allocation2 + $0xe0] sm:$0xfe] }
  0x8f   :  { %v1065_v16 = vrot.slane %v989_v19, 1  ;;  %v1066_v12 = vrot.slane %v991_v52, 1  ;;  %v278_v17 = vmul.f32 %v872_v38, %v1585_v5  ;;  %v369_v47 = vmul.f32 %v1613_v18, %v324_v22  ;;  %v812_v63 = vld [vmem:[#allocation2 + $0x108] sm:$0xff]  ;;  %v325_v52 = vld [vmem:[#allocation2 + $0xf0] sm:$0x1] }
  0x90   :  { %v1106_v62 = vadd.f32 %v1070_v56, %v917_v2  ;;  %v603_v1 = vadd.f32 %v587_v58, %v542_v6  ;;  %v838_v33 = vmul.f32 %v1637_v31, %v809_v10  ;;  %v371_v21 = vmul.f32 %v1613_v18, %v326_v59  ;;  %v874_v19 = vld [vmem:[#allocation3 + $0x88] sm:$0xff] }
  0x91   :  { %v900_v54 = vmul.f32 %v1651_v49, %v871_v44  ;;  %v294_v7 = vadd.f32 %v278_v17, %v233_v4  ;;  %v450_v5 = vrot.slane %v369_v47, 1  ;;  %v529_v38 = vmul.f32 %v1627_v26, %v500_v15 }
  0x92   :  { %1122 = vst.msk [vmem:[%s2270_s7 + $0x68] sm:$0xff] %vm111_vm0, %v1106_v62  ;;  %v1149_v18 = vsel %vm111_vm0, %v1106_v62, 0.0  ;;  %v1195_v43 = vmul.f32 %v1106_v62, %v1106_v62  ;;  %v792_v45 = vadd.f32 %v754_v42, %v603_v1  ;;  %v451_v0 = vrot.slane %v371_v21, 1 }
  0x93   :  { %v2196_v8 = vadd.f32 %v1149_v18, %v1148_v35  ;;  %v1067_v53 = vsel %vm404_vm2, %v1065_v16, %v1066_v12  ;;  %v681_v26 = vmul.f32 %v1680_v29, %v636_v3  ;;  %v683_v32 = vmul.f32 %v1680_v29, %v638_v25 }
  0x94   :  { %v1222_v34 = vsel %vm111_vm0, %v1195_v43, 0.0  ;;  %v854_v58 = vadd.f32 %v838_v33, %v792_v45  ;;  %v452_v51 = vsel %vm404_vm2, %v450_v5, %v451_v0  ;;  %v590_v41 = vmul.f32 %v1630_v27, %v561_v40  ;;  %v950_v5 = vld [vmem:[#allocation2 + $0x110] sm:$0x1] }
  0x95   :  { %v2204_v20 = vadd.f32 %v1222_v34, %v1221_v36  ;;  %v484_v35 = vadd.f32 %v452_v51, %v294_v7  ;;  %v761_v22 = vrot.slane %v681_v26, 1  ;;  %v762_v56 = vrot.slane %v683_v32, 1  ;;  %v948_v7 = vld [vmem:[#allocation2 + $0x100] sm:$0xfe] }
  0x96   :  { %v916_v59 = vadd.f32 %v900_v54, %v854_v58  ;;  %v994_v29 = vmul.f32 %v1685_v48, %v949_v28  ;;  %v996_v2 = vmul.f32 %v1685_v48, %v951_v23  ;;  %v232_v6 = vmul.f32 %v809_v10, %v1570_v60  ;;  %v499_v48 = vld [vmem:[%s2268_s5 + $0xe0] sm:$0xff] }
  0x97   :  { %v545_v42 = vadd.f32 %v529_v38, %v484_v35  ;;  %v841_v4 = vmul.f32 %v1690_v55, %v812_v63  ;;  %v277_v27 = vmul.f32 %v871_v44, %v1573_v61  ;;  %v368_v36 = vmul.f32 %v1592_v9, %v323_v50  ;;  %v635_v60 = vld [vmem:[%s2268_s5 + $0xe0] sm:$0xfe]  ;;  %v637_v61 = vld [vmem:[%s2268_s5 + $0xf0] sm:$0x1] }
  0x98   :  { %v1105_v15 = vadd.f32 %v1067_v53, %v916_v59  ;;  %v763_v16 = vsel %vm404_vm2, %v761_v22, %v762_v56  ;;  %v903_v12 = vmul.f32 %v1694_v46, %v874_v19  ;;  %v370_v17 = vmul.f32 %v1592_v9, %v325_v52  ;;  %v560_v9 = vld [vmem:[%s2269_s6 + $0x70] sm:$0xff]  ;;  %v811_v26 = vld [vmem:[#allocation2 + $0x100] sm:$0xff] }
  0x99   :  { %v606_v55 = vadd.f32 %v590_v41, %v545_v42  ;;  %v1074_v10 = vrot.slane %v994_v29, 1  ;;  %v293_v44 = vadd.f32 %v277_v27, %v232_v6  ;;  %v447_v47 = vrot.slane %v368_v36, 1 }
  0x9a   :  { %1121 = vst [vmem:[%s2270_s7 + $0x60] sm:$0xff] %v1105_v15  ;;  %v1130_v46 = vadd.f32 %v2123_v39, %v1105_v15  ;;  %v1194_v62 = vmul.f32 %v1105_v15, %v1105_v15  ;;  %v1075_v1 = vrot.slane %v996_v2, 1  ;;  %v448_v33 = vrot.slane %v370_v17, 1 }
  0x9b   :  { %v795_v21 = vadd.f32 %v763_v16, %v606_v55  ;;  %v528_v3 = vmul.f32 %v1598_v11, %v499_v48  ;;  %v680_v25 = vmul.f32 %v1634_v30, %v635_v60  ;;  %v682_v54 = vmul.f32 %v1634_v30, %v637_v61 }
  0x9c   :  { %v1203_v38 = vadd.f32 %v2130_v13, %v1194_v62  ;;  %v449_v40 = vsel %vm404_vm2, %v447_v47, %v448_v33  ;;  %v589_v18 = vmul.f32 %v1604_v14, %v560_v9  ;;  %v1076_v53 = vsel %vm404_vm2, %v1074_v10, %v1075_v1  ;;  %v873_v13 = vld [vmem:[#allocation3 + $0x80] sm:$0xff] }
  0x9d   :  { %v857_v43 = vadd.f32 %v841_v4, %v795_v21  ;;  %v483_v39 = vadd.f32 %v449_v40, %v293_v44  ;;  %v758_v45 = vrot.slane %v680_v25, 1  ;;  %v759_v0 = vrot.slane %v682_v54, 1 }
  0x9e   :  { %v993_v11 = vmul.f32 %v1657_v57, %v948_v7  ;;  %v995_v32 = vmul.f32 %v1657_v57, %v950_v5  ;;  %v840_v14 = vmul.f32 %v1637_v31, %v811_v26  ;;  %v902_v35 = vmul.f32 %v1651_v49, %v873_v13 }
  0x9f   :  { %v919_v30 = vadd.f32 %v903_v12, %v857_v43  ;;  %v544_v28 = vadd.f32 %v528_v3, %v483_v39  ;;  %v760_v23 = vsel %vm404_vm2, %v758_v45, %v759_v0  ;;  %v1288_v48 = vmov 1966171168  }
  0xa0   :  { %v1071_v51 = vrot.slane %v993_v11, 1  ;;  %v1072_v41 = vrot.slane %v995_v32, 1  ;;  %v1163_v60 = vunpack.c.l.s4 %v1288_v48 }
  0xa1   :  { %v1108_v34 = vadd.f32 %v1076_v53, %v919_v30  ;;  %v605_v58 = vadd.f32 %v589_v18, %v544_v28 }
  0xa2   :  { %v1073_v59 = vsel %vm404_vm2, %v1071_v51, %v1072_v41  ;;  %v1164_v9 = vunpack.c.0.s8 %v1163_v60 }
  0xa3   :  { %1124 = vst.msk [vmem:[%s2270_s7 + $0x78] sm:$0xff] %vm111_vm0, %v1108_v34  ;;  %v1151_v63 = vsel %vm111_vm0, %v1108_v34, 0.0  ;;  %v1197_v50 = vmul.f32 %v1108_v34, %v1108_v34  ;;  %v794_v57 = vadd.f32 %v760_v23, %v605_v58 }
  0xa4   :  { %v1152_v22 = vadd.f32 %v1151_v63, %v2196_v8  ;;  %v1167_v25 = vsub.s32 %v1164_v9, %v1485_v37 }
  0xa5   :  { %v1224_v56 = vsel %vm111_vm0, %v1197_v50, 0.0  ;;  %v856_v19 = vadd.f32 %v840_v14, %v794_v57 }
  0xa6   :  { %v1153_v52 = vrot.slane %v1152_v22, 4  ;;  %v1225_v31 = vadd.f32 %v1224_v56, %v2204_v20 }
  0xa7   :  { %v918_v29 = vadd.f32 %v902_v35, %v856_v19 }
  0xa8   :  { %v1154_v2 = vadd.f32 %v1153_v52, %v1152_v22  ;;  %v1226_v6 = vrot.slane %v1225_v31, 4 }
  0xa9   :  { %v1107_v42 = vadd.f32 %v1073_v59, %v918_v29 }
  0xaa   :  { %v1155_v4 = vrot.slane %v1154_v2, 2  ;;  %v1227_v27 = vadd.f32 %v1226_v6, %v1225_v31 }
  0xab   :  { %1123 = vst [vmem:[%s2270_s7 + $0x70] sm:$0xff] %v1107_v42  ;;  %v1131_v49 = vadd.f32 %v1130_v46, %v1107_v42  ;;  %v1196_v8 = vmul.f32 %v1107_v42, %v1107_v42 }
  0xac   :  { %v1228_v36 = vrot.slane %v1227_v27, 2  ;;  %v1156_v12 = vadd.f32 %v1155_v4, %v1154_v2 }
  0xad   :  { %v1132_v15 = vrot.slane %v1131_v49, 4  ;;  %v1204_v16 = vadd.f32 %v1203_v38, %v1196_v8 }
  0xae   :  { %v1229_v61 = vadd.f32 %v1228_v36, %v1227_v27  ;;  %v1157_v44 = vrot.slane %v1156_v12, 1 }
  0xaf   :  { %v1133_v17 = vadd.f32 %v1132_v15, %v1131_v49  ;;  %v1205_v20 = vrot.slane %v1204_v16, 4 }
  0xb0   :  { %v1230_v1 = vrot.slane %v1229_v61, 1  ;;  %v1158_v21 = vadd.f32 %v1157_v44, %v1156_v12 }
  0xb1   :  { %v1134_v55 = vrot.slane %v1133_v17, 2  ;;  %v1206_v10 = vadd.f32 %v1205_v20, %v1204_v16 }
  0xb2   :  { %v1231_v7 = vadd.f32 %v1230_v1, %v1229_v61 }
  0xb3   :  { %v1135_v47 = vadd.f32 %v1134_v55, %v1133_v17  ;;  %v1207_v62 = vrot.slane %v1206_v10, 2 }
  0xb5   :  { %v1136_v33 = vrot.slane %v1135_v47, 1  ;;  %v1208_v46 = vadd.f32 %v1207_v62, %v1206_v10 }
  0xb7   :  { %v1137_v3 = vadd.f32 %v1136_v33, %v1135_v47  ;;  %v1209_v54 = vrot.slane %v1208_v46, 1 }
  0xb9   :  { %v1161_v5 = vcombine.low %v1137_v3, %v1158_v21  ;;  %v1210_v38 = vadd.f32 %v1209_v54, %v1208_v46 }
  0xbb   :  { %v1168_v40 = vrot.slane %v1161_v5, %v1167_v25  ;;  %v1234_v18 = vcombine.low %v1210_v38, %v1231_v7 }
  0xbd   :  { %v1175_v43 = vrot.slane %v1168_v40, %v1167_v25  ;;  %v1241_v39 = vrot.slane %v1234_v18, %v1167_v25 }
  0xbf   :  { %1181 = vst.msk [vmem:[%s2271_s8] ss:$2 sm:$0x3] %vm1179_vm3, %v1175_v43  ;;  %v1248_v45 = vrot.slane %v1241_v39, %v1167_v25 }
  0xc1   :  { %1286 = vst.msk [vmem:[%s2271_s8 + $0x1] ss:$2 sm:$0x3] %vm1179_vm3, %v1248_v45 }

</bundles_post_ra>
